<compile_context>
chip_gen: v7x
topology: tpu7x:2x2x1
jax: 0.10.0
libtpu: 0.0.40
codegen_flags: <defaults>
</compile_context>

<pallas_src>
import functools

import jax
import jax.numpy as jnp
from jax.experimental import pallas as pl
from jax.experimental.pallas import tpu as pltpu


def _round_up(v, m):
    return ((v + m - 1) // m) * m


def _block_diag(w):
    """[M, R, C] stacked blocks -> [M*R, M*C] block-diagonal matrix."""
    m, r, c = w.shape
    bd = jnp.zeros((m, r, m, c), w.dtype)
    idx = jnp.arange(m)
    bd = bd.at[idx, :, idx, :].set(w)
    return bd.reshape(m * r, m * c)


def _gmm_kernel(xT_ref, w1T_ref, b1T_ref, w2T_ref, b2T_ref,
                w3muT_ref, b3muT_ref, w3vT_ref, b3vT_ref, selT_ref,
                mean_ref, var_ref, *, num_models):
    f32 = jnp.float32
    xT = xT_ref[...]                                               # [D_in, TB]

    # fc1 for all models at once (dropout p=0 is identity); batch on lanes.
    h1 = jnp.dot(w1T_ref[...], xT, preferred_element_type=f32) + b1T_ref[...]
    h1 = jnp.maximum(h1, 0.0)                                      # [MHp, TB]

    # fc2 as one block-diagonal matmul (lane-dense, MHp is 128-aligned).
    h2 = jnp.dot(w2T_ref[...], h1, preferred_element_type=f32) + b2T_ref[...]
    h2 = jnp.maximum(h2, 0.0)                                      # [MHp, TB]

    # fc3 split into mean / variance heads (block-diagonal).
    mu = jnp.dot(w3muT_ref[...], h2, preferred_element_type=f32) + b3muT_ref[...]
    vraw = jnp.dot(w3vT_ref[...], h2, preferred_element_type=f32) + b3vT_ref[...]
    var = jax.nn.softplus(vraw) + 1e-6                             # [M*no, TB]

    # Mixture reduction over models via a tiny selection matmul (no shuffles).
    selT = selT_ref[...]                                           # [no, M*no]
    inv_m = 1.0 / num_models
    mean_mix = jnp.dot(selT, mu, preferred_element_type=f32) * inv_m
    ev_mean = jnp.dot(selT, var + mu * mu, preferred_element_type=f32) * inv_m

    # Lane-dense stores: [no, TB] with batch on the lane axis.
    mean_ref[...] = mean_mix
    var_ref[...] = jnp.maximum(ev_mean - mean_mix * mean_mix, 0.0) + 1e-6


def prepare_fused_params(params):
    """One-time layout plumbing: fuse / transpose / pad the per-model weights.

    Call this ONCE (not per forward): it builds the block-diagonal fc2/fc3,
    pads M*H to a multiple of 128 and pre-transposes everything so the kernel
    keeps the batch on the lane axis.
    """
    w1, b1 = params["w1"], params["b1"]          # [M, D, H], [M, 1, H]
    w2, b2 = params["w2"], params["b2"]          # [M, H, H], [M, 1, H]
    w3, b3 = params["w3"], params["b3"]          # [M, H, 2*no], [M, 1, 2*no]
    num_models, d_in, hidden = w1.shape
    n_out = w3.shape[2] // 2
    mh = num_models * hidden
    mhp = _round_up(mh, 128)                     # 320 -> 384 (lane-aligned)
    mo = num_models * n_out
    pad = mhp - mh

    w1T = jnp.pad(jnp.transpose(w1, (0, 2, 1)).reshape(mh, d_in),
                  ((0, pad), (0, 0)))                              # [MHp, D]
    b1T = jnp.pad(jnp.transpose(b1, (0, 2, 1)).reshape(mh, 1),
                  ((0, pad), (0, 0)))                              # [MHp, 1]
    w2T_bd = jnp.pad(_block_diag(jnp.transpose(w2, (0, 2, 1))),
                     ((0, pad), (0, pad)))                         # [MHp, MHp]
    b2T = jnp.pad(jnp.transpose(b2, (0, 2, 1)).reshape(mh, 1),
                  ((0, pad), (0, 0)))
    w3muT_bd = jnp.pad(_block_diag(jnp.transpose(w3[:, :, :n_out], (0, 2, 1))),
                       ((0, 0), (0, pad)))                         # [M*no, MHp]
    w3vT_bd = jnp.pad(_block_diag(jnp.transpose(w3[:, :, n_out:], (0, 2, 1))),
                      ((0, 0), (0, pad)))
    b3muT = jnp.transpose(b3[:, :, :n_out], (0, 2, 1)).reshape(mo, 1)
    b3vT = jnp.transpose(b3[:, :, n_out:], (0, 2, 1)).reshape(mo, 1)
    selT = jnp.tile(jnp.eye(n_out, dtype=jnp.float32), (1, num_models))

    return {
        "w1T": w1T, "b1T": b1T, "w2T_bd": w2T_bd, "b2T": b2T,
        "w3muT_bd": w3muT_bd, "b3muT": b3muT,
        "w3vT_bd": w3vT_bd, "b3vT": b3vT,
        "selT": selT, "num_models": num_models,
    }


def gaussian_mixture_mlp_forward(x, fused, *, batch_tile=1024):
    """x: [B, D_in] float32. fused: output of prepare_fused_params."""
    w1T, b1T = fused["w1T"], fused["b1T"]
    w2T, b2T = fused["w2T_bd"], fused["b2T"]
    w3muT, b3muT = fused["w3muT_bd"], fused["b3muT"]
    w3vT, b3vT = fused["w3vT_bd"], fused["b3vT"]
    selT = fused["selT"]
    num_models = fused["num_models"]

    mhp, d_in = w1T.shape
    n_out, mo = selT.shape
    batch = x.shape[0]

    # Batch on the lane axis (one tiny wrapper transpose of a [B, D_in] array).
    x_T = x.T

    # Batch tiling: single "parallel" grid axis; no pad copy of x (ragged last
    # block is masked by Pallas).  For batches > 128 always have >= 2 grid
    # steps so both TensorCores get work on v7x.
    if batch <= 128:
        tb = batch                                      # block == full dim
    else:
        half = _round_up(pl.cdiv(batch, 2), 128)        # lane-aligned tile
        tb = min(_round_up(batch_tile, 128), half)
    grid = (pl.cdiv(batch, tb),)

    kernel = functools.partial(_gmm_kernel, num_models=num_models)

    def tile_map(i):
        return (0, i)

    def resident(i):                 # constant block index -> stays in VMEM
        return (0, 0)

    grid_spec = pltpu.PrefetchScalarGridSpec(
        num_scalar_prefetch=0,
        grid=grid,
        in_specs=[
            pl.BlockSpec((d_in, tb), tile_map),       # x^T tile
            pl.BlockSpec((mhp, d_in), resident),      # W1^T
            pl.BlockSpec((mhp, 1), resident),         # b1
            pl.BlockSpec((mhp, mhp), resident),       # W2^T block-diag
            pl.BlockSpec((mhp, 1), resident),         # b2
            pl.BlockSpec((mo, mhp), resident),        # W3 mean head^T block-diag
            pl.BlockSpec((mo, 1), resident),          # b3 mean
            pl.BlockSpec((mo, mhp), resident),        # W3 var head^T block-diag
            pl.BlockSpec((mo, 1), resident),          # b3 var
            pl.BlockSpec((n_out, mo), resident),      # model-sum selection
        ],
        out_specs=[
            pl.BlockSpec((n_out, tb), tile_map),      # mean^T (lane-dense)
            pl.BlockSpec((n_out, tb), tile_map),      # var^T  (lane-dense)
        ],
    )

    weight_bytes = 4 * (w1T.size + b1T.size + w2T.size + b2T.size
                        + w3muT.size + b3muT.size + w3vT.size + b3vT.size
                        + selT.size)
    cost = pl.CostEstimate(
        flops=2 * batch * (mhp * (d_in + mhp + 2 * mo) + 2 * mo * n_out),
        transcendentals=batch * mo,
        bytes_accessed=4 * (batch * d_in + 2 * batch * n_out) + weight_bytes,
    )

    mean_t, var_t = pl.pallas_call(
        kernel,
        out_shape=(jax.ShapeDtypeStruct((n_out, batch), jnp.float32),
                   jax.ShapeDtypeStruct((n_out, batch), jnp.float32)),
        grid_spec=grid_spec,
        compiler_params=pltpu.CompilerParams(
            dimension_semantics=("parallel",)),
        cost_estimate=cost,
    )(x_T, w1T, b1T, w2T, b2T, w3muT, b3muT, w3vT, b3vT, selT)

    return mean_t.T, var_t.T


def init_params(key, num_models, inputs, outputs, hidden=64):
    """Deterministic PyTorch-Linear-style init (uniform +-1/sqrt(fan_in))."""
    n_out2 = 2 * outputs  # fc3 output dim = outputs * 2
    keys = jax.random.split(key, 6)

    def u(k, shape, fan_in):
        bound = 1.0 / jnp.sqrt(fan_in)
        return jax.random.uniform(k, shape, jnp.float32, -bound, bound)

    return {
        "w1": u(keys[0], (num_models, inputs, hidden), inputs),
        "b1": u(keys[1], (num_models, 1, hidden), inputs),
        "w2": u(keys[2], (num_models, hidden, hidden), hidden),
        "b2": u(keys[3], (num_models, 1, hidden), hidden),
        "w3": u(keys[4], (num_models, hidden, n_out2), hidden),
        "b3": u(keys[5], (num_models, 1, n_out2), hidden),
    }


def reference_forward(x, params):
    """Pure-JAX reference matching the PyTorch module semantics."""
    means, variances = [], []
    num_models = params["w1"].shape[0]
    n_out = params["w3"].shape[2] // 2
    for i in range(num_models):
        h1 = jnp.maximum(x @ params["w1"][i] + params["b1"][i][0], 0.0)
        h2 = jnp.maximum(h1 @ params["w2"][i] + params["b2"][i][0], 0.0)
        y = h2 @ params["w3"][i] + params["b3"][i][0]
        means.append(y[:, :n_out])
        variances.append(jax.nn.softplus(y[:, n_out:]) + 1e-6)
    means = jnp.stack(means)
    variances = jnp.stack(variances)
    mean = means.mean(axis=0)
    variance = (variances + means ** 2).mean(axis=0) - mean ** 2
    variance = jnp.maximum(variance, 0.0) + 1e-6
    return mean, variance


if __name__ == "__main__":
    num_models, inputs, outputs = 5, 4, 2

    key = jax.random.PRNGKey(0)
    pkey, xkey, xkey2 = jax.random.split(key, 3)
    params = init_params(pkey, num_models, inputs, outputs)
    fused = prepare_fused_params(params)   # one-time prep, outside the forward

    # Small batch (single tile).
    x = jax.random.normal(xkey, (8, inputs), jnp.float32)
    mean, variance = gaussian_mixture_mlp_forward(x, fused)
    jax.block_until_ready((mean, variance))
    ref_mean, ref_var = reference_forward(x, params)
    assert mean.shape == ref_mean.shape and variance.shape == ref_var.shape
    assert jnp.allclose(mean, ref_mean, atol=1e-4, rtol=1e-4)
    assert jnp.allclose(variance, ref_var, atol=1e-4, rtol=1e-4)

    # Larger ragged batch exercising the multi-tile "parallel" batch axis.
    x2 = jax.random.normal(xkey2, (300, inputs), jnp.float32)
    mean2, var2 = gaussian_mixture_mlp_forward(x2, fused)
    jax.block_until_ready((mean2, var2))
    ref_mean2, ref_var2 = reference_forward(x2, params)
    assert jnp.allclose(mean2, ref_mean2, atol=1e-4, rtol=1e-4)
    assert jnp.allclose(var2, ref_var2, atol=1e-4, rtol=1e-4)

    print("KERNEL_OK")
</pallas_src>

<mosaic_0001>
module attributes {stable_mosaic.version = 11 : i64} {
  func.func @_gmm_kernel(%arg0: i32, %arg1: memref<4x8xf32, #tpu.memory_space<vmem>>, %arg2: memref<384x4xf32, #tpu.memory_space<vmem>>, %arg3: memref<384x1xf32, #tpu.memory_space<vmem>>, %arg4: memref<384x384xf32, #tpu.memory_space<vmem>>, %arg5: memref<384x1xf32, #tpu.memory_space<vmem>>, %arg6: memref<10x384xf32, #tpu.memory_space<vmem>>, %arg7: memref<10x1xf32, #tpu.memory_space<vmem>>, %arg8: memref<10x384xf32, #tpu.memory_space<vmem>>, %arg9: memref<10x1xf32, #tpu.memory_space<vmem>>, %arg10: memref<2x10xf32, #tpu.memory_space<vmem>>, %arg11: memref<2x8xf32, #tpu.memory_space<vmem>>, %arg12: memref<2x8xf32, #tpu.memory_space<vmem>>) attributes {dimension_semantics = [#tpu.dimension_semantics<parallel>], iteration_bounds = array<i64: 1>, scalar_prefetch = 0 : i64, scratch_operands = 0 : i64, tpu.core_type = #tpu.core_type<tc>, window_params = [{transform_indices = @transform_0, window_bounds = array<i64: 4, 8>}, {pipeline_mode = #tpu.pipeline_mode<synchronous>, transform_indices = @transform_1, window_bounds = array<i64: 384, 4>}, {pipeline_mode = #tpu.pipeline_mode<synchronous>, transform_indices = @transform_2, window_bounds = array<i64: 384, 1>}, {pipeline_mode = #tpu.pipeline_mode<synchronous>, transform_indices = @transform_3, window_bounds = array<i64: 384, 384>}, {pipeline_mode = #tpu.pipeline_mode<synchronous>, transform_indices = @transform_4, window_bounds = array<i64: 384, 1>}, {pipeline_mode = #tpu.pipeline_mode<synchronous>, transform_indices = @transform_5, window_bounds = array<i64: 10, 384>}, {pipeline_mode = #tpu.pipeline_mode<synchronous>, transform_indices = @transform_6, window_bounds = array<i64: 10, 1>}, {pipeline_mode = #tpu.pipeline_mode<synchronous>, transform_indices = @transform_7, window_bounds = array<i64: 10, 384>}, {pipeline_mode = #tpu.pipeline_mode<synchronous>, transform_indices = @transform_8, window_bounds = array<i64: 10, 1>}, {pipeline_mode = #tpu.pipeline_mode<synchronous>, transform_indices = @transform_9, window_bounds = array<i64: 2, 10>}, {transform_indices = @transform_10, window_bounds = array<i64: 2, 8>}, {transform_indices = @transform_11, window_bounds = array<i64: 2, 8>}]} {
    %c0 = arith.constant 0 : index
    %c0_0 = arith.constant 0 : index
    %0 = vector.load %arg1[%c0, %c0_0] : memref<4x8xf32, #tpu.memory_space<vmem>>, vector<4x8xf32>
    %c0_1 = arith.constant 0 : index
    %c0_2 = arith.constant 0 : index
    %1 = vector.load %arg2[%c0_1, %c0_2] : memref<384x4xf32, #tpu.memory_space<vmem>>, vector<384x4xf32>
    %cst = arith.constant dense<0.000000e+00> : vector<384x8xf32>
    %2 = tpu.matmul %1, %0, %cst {dimension_numbers = #tpu.dot_dimension_numbers<[1], [0], [0], [1], [0, 0, 1, 1], [], []>} : vector<384x4xf32>, vector<4x8xf32>, vector<384x8xf32> -> vector<384x8xf32>
    %c0_3 = arith.constant 0 : index
    %c0_4 = arith.constant 0 : index
    %3 = vector.load %arg3[%c0_3, %c0_4] : memref<384x1xf32, #tpu.memory_space<vmem>>, vector<384x1xf32>
    %4 = vector.broadcast %3 : vector<384x1xf32> to vector<384x8xf32>
    %5 = arith.addf %2, %4 : vector<384x8xf32>
    %cst_5 = arith.constant 0.000000e+00 : f32
    %6 = vector.broadcast %cst_5 : f32 to vector<384x8xf32>
    %7 = arith.maximumf %5, %6 : vector<384x8xf32>
    %c0_6 = arith.constant 0 : index
    %c0_7 = arith.constant 0 : index
    %8 = vector.load %arg4[%c0_6, %c0_7] : memref<384x384xf32, #tpu.memory_space<vmem>>, vector<384x384xf32>
    %cst_8 = arith.constant dense<0.000000e+00> : vector<384x8xf32>
    %9 = tpu.matmul %8, %7, %cst_8 {dimension_numbers = #tpu.dot_dimension_numbers<[1], [0], [0], [1], [0, 0, 1, 1], [], []>} : vector<384x384xf32>, vector<384x8xf32>, vector<384x8xf32> -> vector<384x8xf32>
    %c0_9 = arith.constant 0 : index
    %c0_10 = arith.constant 0 : index
    %10 = vector.load %arg5[%c0_9, %c0_10] : memref<384x1xf32, #tpu.memory_space<vmem>>, vector<384x1xf32>
    %11 = vector.broadcast %10 : vector<384x1xf32> to vector<384x8xf32>
    %12 = arith.addf %9, %11 : vector<384x8xf32>
    %cst_11 = arith.constant 0.000000e+00 : f32
    %13 = vector.broadcast %cst_11 : f32 to vector<384x8xf32>
    %14 = arith.maximumf %12, %13 : vector<384x8xf32>
    %c0_12 = arith.constant 0 : index
    %c0_13 = arith.constant 0 : index
    %15 = vector.load %arg6[%c0_12, %c0_13] : memref<10x384xf32, #tpu.memory_space<vmem>>, vector<10x384xf32>
    %cst_14 = arith.constant dense<0.000000e+00> : vector<10x8xf32>
    %16 = tpu.matmul %15, %14, %cst_14 {dimension_numbers = #tpu.dot_dimension_numbers<[1], [0], [0], [1], [0, 0, 1, 1], [], []>} : vector<10x384xf32>, vector<384x8xf32>, vector<10x8xf32> -> vector<10x8xf32>
    %c0_15 = arith.constant 0 : index
    %c0_16 = arith.constant 0 : index
    %17 = vector.load %arg7[%c0_15, %c0_16] : memref<10x1xf32, #tpu.memory_space<vmem>>, vector<10x1xf32>
    %18 = vector.broadcast %17 : vector<10x1xf32> to vector<10x8xf32>
    %19 = arith.addf %16, %18 : vector<10x8xf32>
    %c0_17 = arith.constant 0 : index
    %c0_18 = arith.constant 0 : index
    %20 = vector.load %arg8[%c0_17, %c0_18] : memref<10x384xf32, #tpu.memory_space<vmem>>, vector<10x384xf32>
    %cst_19 = arith.constant dense<0.000000e+00> : vector<10x8xf32>
    %21 = tpu.matmul %20, %14, %cst_19 {dimension_numbers = #tpu.dot_dimension_numbers<[1], [0], [0], [1], [0, 0, 1, 1], [], []>} : vector<10x384xf32>, vector<384x8xf32>, vector<10x8xf32> -> vector<10x8xf32>
    %c0_20 = arith.constant 0 : index
    %c0_21 = arith.constant 0 : index
    %22 = vector.load %arg9[%c0_20, %c0_21] : memref<10x1xf32, #tpu.memory_space<vmem>>, vector<10x1xf32>
    %23 = vector.broadcast %22 : vector<10x1xf32> to vector<10x8xf32>
    %24 = arith.addf %21, %23 : vector<10x8xf32>
    %cst_22 = arith.constant 0.000000e+00 : f32
    %25 = vector.broadcast %cst_22 : f32 to vector<10x8xf32>
    %26 = arith.maximumf %24, %25 : vector<10x8xf32>
    %27 = vector.broadcast %cst_22 : f32 to vector<10x8xf32>
    %28 = arith.subf %24, %27 : vector<10x8xf32>
    %29 = arith.cmpf one, %28, %28 : vector<10x8xf32>
    %30 = vector.broadcast %cst_22 : f32 to vector<10x8xf32>
    %31 = arith.addf %24, %30 : vector<10x8xf32>
    %32 = math.absf %28 : vector<10x8xf32>
    %cst_23 = arith.constant 0.000000e+00 : f32
    %33 = vector.broadcast %cst_23 : f32 to vector<10x8xf32>
    %34 = arith.subf %33, %32 : vector<10x8xf32>
    %35 = math.exp %34 : vector<10x8xf32>
    %36 = math.log1p %35 : vector<10x8xf32>
    %37 = arith.addf %26, %36 : vector<10x8xf32>
    %38 = arith.select %29, %31, %37 : vector<10x8xi1>, vector<10x8xf32>
    %cst_24 = arith.constant 9.99999997E-7 : f32
    %39 = vector.broadcast %cst_24 : f32 to vector<10x8xf32>
    %40 = arith.addf %38, %39 : vector<10x8xf32>
    %c0_25 = arith.constant 0 : index
    %c0_26 = arith.constant 0 : index
    %41 = vector.load %arg10[%c0_25, %c0_26] : memref<2x10xf32, #tpu.memory_space<vmem>>, vector<2x10xf32>
    %cst_27 = arith.constant dense<0.000000e+00> : vector<2x8xf32>
    %42 = tpu.matmul %41, %19, %cst_27 {dimension_numbers = #tpu.dot_dimension_numbers<[1], [0], [0], [1], [0, 0, 1, 1], [], []>} : vector<2x10xf32>, vector<10x8xf32>, vector<2x8xf32> -> vector<2x8xf32>
    %cst_28 = arith.constant 2.000000e-01 : f32
    %43 = vector.broadcast %cst_28 : f32 to vector<2x8xf32>
    %44 = arith.mulf %42, %43 : vector<2x8xf32>
    %45 = arith.mulf %19, %19 : vector<10x8xf32>
    %46 = arith.addf %40, %45 : vector<10x8xf32>
    %cst_29 = arith.constant dense<0.000000e+00> : vector<2x8xf32>
    %47 = tpu.matmul %41, %46, %cst_29 {dimension_numbers = #tpu.dot_dimension_numbers<[1], [0], [0], [1], [0, 0, 1, 1], [], []>} : vector<2x10xf32>, vector<10x8xf32>, vector<2x8xf32> -> vector<2x8xf32>
    %cst_30 = arith.constant 2.000000e-01 : f32
    %48 = vector.broadcast %cst_30 : f32 to vector<2x8xf32>
    %49 = arith.mulf %47, %48 : vector<2x8xf32>
    %c0_31 = arith.constant 0 : index
    %c0_32 = arith.constant 0 : index
    %50 = vector.load %arg11[%c0_31, %c0_32] : memref<2x8xf32, #tpu.memory_space<vmem>>, vector<2x8xf32>
    tpu.vector_store %arg11[%c0_31, %c0_32], %44 {strides = array<i32>} : memref<2x8xf32, #tpu.memory_space<vmem>>, vector<2x8xf32>,
    %51 = arith.mulf %44, %44 : vector<2x8xf32>
    %52 = arith.subf %49, %51 : vector<2x8xf32>
    %cst_33 = arith.constant 0.000000e+00 : f32
    %53 = vector.broadcast %cst_33 : f32 to vector<2x8xf32>
    %54 = arith.maximumf %52, %53 : vector<2x8xf32>
    %cst_34 = arith.constant 9.99999997E-7 : f32
    %55 = vector.broadcast %cst_34 : f32 to vector<2x8xf32>
    %56 = arith.addf %54, %55 : vector<2x8xf32>
    %c0_35 = arith.constant 0 : index
    %c0_36 = arith.constant 0 : index
    %57 = vector.load %arg12[%c0_35, %c0_36] : memref<2x8xf32, #tpu.memory_space<vmem>>, vector<2x8xf32>
    tpu.vector_store %arg12[%c0_35, %c0_36], %56 {strides = array<i32>} : memref<2x8xf32, #tpu.memory_space<vmem>>, vector<2x8xf32>,
    return
  }
  func.func @transform_0(%arg0: i32) -> (i32, i32) {
    %c0_i32 = arith.constant 0 : i32
    %c0_i32_0 = arith.constant 0 : i32
    return %c0_i32, %arg0 : i32, i32
  }
  func.func @transform_1(%arg0: i32) -> (i32, i32) {
    %c0_i32 = arith.constant 0 : i32
    %c0_i32_0 = arith.constant 0 : i32
    %c0_i32_1 = arith.constant 0 : i32
    return %c0_i32, %c0_i32_0 : i32, i32
  }
  func.func @transform_2(%arg0: i32) -> (i32, i32) {
    %c0_i32 = arith.constant 0 : i32
    %c0_i32_0 = arith.constant 0 : i32
    %c0_i32_1 = arith.constant 0 : i32
    return %c0_i32, %c0_i32_0 : i32, i32
  }
  func.func @transform_3(%arg0: i32) -> (i32, i32) {
    %c0_i32 = arith.constant 0 : i32
    %c0_i32_0 = arith.constant 0 : i32
    %c0_i32_1 = arith.constant 0 : i32
    return %c0_i32, %c0_i32_0 : i32, i32
  }
  func.func @transform_4(%arg0: i32) -> (i32, i32) {
    %c0_i32 = arith.constant 0 : i32
    %c0_i32_0 = arith.constant 0 : i32
    %c0_i32_1 = arith.constant 0 : i32
    return %c0_i32, %c0_i32_0 : i32, i32
  }
  func.func @transform_5(%arg0: i32) -> (i32, i32) {
    %c0_i32 = arith.constant 0 : i32
    %c0_i32_0 = arith.constant 0 : i32
    %c0_i32_1 = arith.constant 0 : i32
    return %c0_i32, %c0_i32_0 : i32, i32
  }
  func.func @transform_6(%arg0: i32) -> (i32, i32) {
    %c0_i32 = arith.constant 0 : i32
    %c0_i32_0 = arith.constant 0 : i32
    %c0_i32_1 = arith.constant 0 : i32
    return %c0_i32, %c0_i32_0 : i32, i32
  }
  func.func @transform_7(%arg0: i32) -> (i32, i32) {
    %c0_i32 = arith.constant 0 : i32
    %c0_i32_0 = arith.constant 0 : i32
    %c0_i32_1 = arith.constant 0 : i32
    return %c0_i32, %c0_i32_0 : i32, i32
  }
  func.func @transform_8(%arg0: i32) -> (i32, i32) {
    %c0_i32 = arith.constant 0 : i32
    %c0_i32_0 = arith.constant 0 : i32
    %c0_i32_1 = arith.constant 0 : i32
    return %c0_i32, %c0_i32_0 : i32, i32
  }
  func.func @transform_9(%arg0: i32) -> (i32, i32) {
    %c0_i32 = arith.constant 0 : i32
    %c0_i32_0 = arith.constant 0 : i32
    %c0_i32_1 = arith.constant 0 : i32
    return %c0_i32, %c0_i32_0 : i32, i32
  }
  func.func @transform_10(%arg0: i32) -> (i32, i32) {
    %c0_i32 = arith.constant 0 : i32
    %c0_i32_0 = arith.constant 0 : i32
    return %c0_i32, %arg0 : i32, i32
  }
  func.func @transform_11(%arg0: i32) -> (i32, i32) {
    %c0_i32 = arith.constant 0 : i32
    %c0_i32_0 = arith.constant 0 : i32
    return %c0_i32, %arg0 : i32, i32
  }
}

</mosaic_0001>

<bundles_post_ra>
// kernel: tpu_custom_call.1
= control target key start
LH: loop header
LB: loop body
LE: loop exit
PB: predicated region body
PF: predicated region fallthrough
CT: control target
= control target key end

     0   :  { %17 = vsyncpa [#allocation3], 0  ;;  %s4685_s0 = inlined_call_operand.vmem [shape: f32[4,8], index: 0, kind: input, shape index: {}]   ;;  %s4686_s1 = inlined_call_operand.vmem [shape: f32[384,4], index: 1, kind: input, shape index: {}]   ;;  %s4687_s2 = inlined_call_operand.vmem [shape: f32[384,1], index: 2, kind: input, shape index: {}]   ;;  %s4688_s3 = inlined_call_operand.vmem [shape: f32[384,384], index: 3, kind: input, shape index: {}]   ;;  %s4689_s4 = inlined_call_operand.vmem [shape: f32[384,1], index: 4, kind: input, shape index: {}]   ;;  %s4690_s5 = inlined_call_operand.vmem [shape: f32[10,384], index: 5, kind: input, shape index: {}]   ;;  %s4691_s6 = inlined_call_operand.vmem [shape: f32[10,1], index: 6, kind: input, shape index: {}]   ;;  %s4692_s7 = inlined_call_operand.hbm [shape: f32[10,384], index: 7, kind: input, shape index: {}]   ;;  %s4693_s8 = inlined_call_operand.vmem [shape: f32[10,1], index: 8, kind: input, shape index: {}]   ;;  %s4694_s9 = inlined_call_operand.vmem [shape: f32[2,10], index: 9, kind: input, shape index: {}]   ;;  %s4695_s10 = inlined_call_operand.hbm [shape: f32[2,8], index: 10, kind: output, shape index: {0}]   ;;  %s4696_s11 = inlined_call_operand.hbm [shape: f32[2,8], index: 11, kind: output, shape index: {1}]  }
   0x1   :  { %18 = vsyncpa [#allocation4], 0 }
   0x2   :  { %19 = vsyncpa [#allocation7], 0  ;;  %s3404_s17 = smov [#allocation2]   ;;  %s3332_s21 = scalar_lea.hbm %s4692_s7, 768 }
   0x3   :  { %s39_s18 = sshll.u32 %s3404_s17, 4  ;;  %p3333_p0 = scmp.ne.s32.totalorder %s4692_s7, %s3332_s21  ;;  %s40_s18 = int_to_ptr.vmem [resolvable:$true] %s39_s18 }
   0x4   :  { %p3336_p1 = scmp.lt.u32.totalorder %s3332_s21, %s4692_s7 }
   0x6   :  { %p3338_p2 = pnand %p3336_p1, %p3333_p0 }
   0x8   :  { %3341 = shalt.err (!%p3338_p2)
}
   0x9   :  { %s3342_s26 = scalar_lea.vmem %s40_s18, 768  ;;  %p3347_p4 = scmp.lt.s32.totalorder %s40_s18, %s40_s18 }
   0xa   :  { %p3343_p3 = scmp.ne.s32.totalorder %s40_s18, %s3342_s26  ;;  %p3348_p5 = scmp.lt.s32.totalorder %s3342_s26, %s3342_s26 }
   0xc   :  { %p3349_p6 = por %p3348_p5, %p3347_p4 }
   0xe   :  { %p3350_p7 = pnand %p3349_p6, %p3343_p3 }
  0x10   :  { %3353 = shalt.err (!%p3350_p7)
}
  0x11   :  { %s3405_s27 = smov 384   ;;  %s3406_s28 = smov 24  }
  0x12   :  { %45 = dma.hbm_to_vmem [thread:$0]  %s4692_s7, 768, %s40_s18, [#allocation3], %s3405_s27, %s3405_s27, %s3406_s28  }
  0x13   :  { %3398 = dma.done.wait [#allocation3], 768  }
  0x14   :  { %3399 = vsyncadd [#allocation3], 4294966528  ;;  %v3407_v0 = vmov 0   ;;  %vm535_vm0 = vcmask 1043456   ;;  %vm390_vm1 = vcmask 31744   ;;  %v104_v1 = vld [vmem:[%s4687_s2 + $0x10] sm:$0xff] }
  0x15   :  { %3323 = vset.pattern.permute.xlu1 %v3407_v0  ;;  %3322 = vset.pattern.permute.xlu0 %v3407_v0  ;;  %v102_v2 = vld [vmem:[%s4687_s2] sm:$0xff]  ;;  %v55_v5 = vld [vmem:[%s4686_s1 + $0x8] sm:$0xff]  ;;  %v105_v6 = vld [vmem:[%s4687_s2 + $0x18] sm:$0xff]  ;;  %vm3409_vm2 = vmmov 0   ;;  %vm2361_vm3 = vcmask 1041408   ;;  %vm3411_vm4 = vmmov 1  }
  0x16   :  { %v53_v3 = vld [vmem:[%s4685_s0] sm:$0xf]  ;;  %162 = vperm.xlu1 %3323, %v104_v1   ;;  %152 = vperm.xlu0 %3322, %v102_v2   ;;  %v103_v7 = vld [vmem:[%s4687_s2 + $0x8] sm:$0xff]  ;;  %v56_v8 = vld [vmem:[%s4686_s1 + $0x10] sm:$0xff]  ;;  %vm2357_vm6 = vcmask 80896   ;;  %vm2514_vm11 = vcmask 58368  }
  0x17   :  { %v54_v4 = vld [vmem:[%s4686_s1] sm:$0xff]  ;;  %2834 = vmatprep.subr.msk.mxu0 %vm535_vm0, %v53_v3  ;;  %v57_v9 = vld [vmem:[%s4686_s1 + $0x18] sm:$0xff]  ;;  %v107_v10 = vld [vmem:[%s4687_s2 + $0x28] sm:$0xff] }
  0x18   :  { %2836 = vmatprep.mubr.msk.f32.mxu0 %vm390_vm1, %v54_v4  ;;  %2835 = vmatpush3.msk.msra.mxu0 %vm535_vm0, %v53_v3  ;;  %v106_v11 = vld [vmem:[%s4687_s2 + $0x20] sm:$0xff]  ;;  %v59_v13 = vld [vmem:[%s4686_s1 + $0x28] sm:$0xff]  ;;  %v109_v14 = vld [vmem:[%s4687_s2 + $0x38] sm:$0xff] }
  0x19   :  { %2837 = vmatmul.mubr.msk.f32.vlgmr.msra.gmra.mrb[0].mxu0 %vm390_vm1, %v55_v5  ;;  %v58_v12 = vld [vmem:[%s4686_s1 + $0x20] sm:$0xff]  ;;  %v108_v15 = vld [vmem:[%s4687_s2 + $0x30] sm:$0xff]  ;;  %v61_v17 = vld [vmem:[%s4686_s1 + $0x38] sm:$0xff] }
  0x1a   :  { %167 = vperm.xlu1 %3323, %v105_v6   ;;  %157 = vperm.xlu0 %3322, %v103_v7   ;;  %v60_v16 = vld [vmem:[%s4686_s1 + $0x30] sm:$0xff]  ;;  %v111_v18 = vld [vmem:[%s4687_s2 + $0x48] sm:$0xff]  ;;  %v110_v19 = vld [vmem:[%s4687_s2 + $0x40] sm:$0xff] }
  0x1b   :  { %2839 = vmatprep.mubr.msk.f32.mxu0 %vm390_vm1, %v56_v8  ;;  %v62_v20 = vld [vmem:[%s4686_s1 + $0x40] sm:$0xff]  ;;  %v63_v21 = vld [vmem:[%s4686_s1 + $0x48] sm:$0xff]  ;;  %v113_v22 = vld [vmem:[%s4687_s2 + $0x58] sm:$0xff] }
  0x1c   :  { %v112_v23 = vld [vmem:[%s4687_s2 + $0x50] sm:$0xff]  ;;  %v65_v25 = vld [vmem:[%s4686_s1 + $0x58] sm:$0xff]  ;;  %v115_v26 = vld [vmem:[%s4687_s2 + $0x68] sm:$0xff] }
  0x1d   :  { %2840 = vmatmul.mubr.msk.f32.gmra.mrb[2].mxu0 %vm390_vm1, %v57_v9  ;;  %v64_v24 = vld [vmem:[%s4686_s1 + $0x50] sm:$0xff]  ;;  %v114_v27 = vld [vmem:[%s4687_s2 + $0x60] sm:$0xff]  ;;  %v67_v29 = vld [vmem:[%s4686_s1 + $0x68] sm:$0xff] }
  0x1e   :  { %177 = vperm.xlu1 %3323, %v107_v10   ;;  %172 = vperm.xlu0 %3322, %v106_v11   ;;  %v66_v28 = vld [vmem:[%s4686_s1 + $0x60] sm:$0xff]  ;;  %v117_v30 = vld [vmem:[%s4687_s2 + $0x78] sm:$0xff]  ;;  %v116_v31 = vld [vmem:[%s4687_s2 + $0x70] sm:$0xff] }
  0x1f   :  { %2842 = vmatprep.mubr.msk.f32.mxu0 %vm390_vm1, %v58_v12  ;;  %v68_v32 = vld [vmem:[%s4686_s1 + $0x70] sm:$0xff]  ;;  %v69_v33 = vld [vmem:[%s4686_s1 + $0x78] sm:$0xff]  ;;  %v119_v34 = vld [vmem:[%s4687_s2 + $0x88] sm:$0xff] }
  0x20   :  { %v118_v35 = vld [vmem:[%s4687_s2 + $0x80] sm:$0xff]  ;;  %v71_v37 = vld [vmem:[%s4686_s1 + $0x88] sm:$0xff]  ;;  %v121_v38 = vld [vmem:[%s4687_s2 + $0x98] sm:$0xff] }
  0x21   :  { %2843 = vmatmul.mubr.msk.f32.gmra.mrb[4].mxu0 %vm390_vm1, %v59_v13  ;;  %v70_v36 = vld [vmem:[%s4686_s1 + $0x80] sm:$0xff]  ;;  %v120_v39 = vld [vmem:[%s4687_s2 + $0x90] sm:$0xff]  ;;  %v73_v41 = vld [vmem:[%s4686_s1 + $0x98] sm:$0xff] }
  0x22   :  { %187 = vperm.xlu1 %3323, %v109_v14   ;;  %182 = vperm.xlu0 %3322, %v108_v15   ;;  %v72_v40 = vld [vmem:[%s4686_s1 + $0x90] sm:$0xff]  ;;  %v123_v42 = vld [vmem:[%s4687_s2 + $0xa8] sm:$0xff]  ;;  %v122_v43 = vld [vmem:[%s4687_s2 + $0xa0] sm:$0xff] }
  0x23   :  { %2845 = vmatprep.mubr.msk.f32.mxu0 %vm390_vm1, %v60_v16  ;;  %v74_v44 = vld [vmem:[%s4686_s1 + $0xa0] sm:$0xff]  ;;  %v75_v45 = vld [vmem:[%s4686_s1 + $0xa8] sm:$0xff]  ;;  %v125_v46 = vld [vmem:[%s4687_s2 + $0xb8] sm:$0xff] }
  0x24   :  { %v124_v47 = vld [vmem:[%s4687_s2 + $0xb0] sm:$0xff]  ;;  %v77_v49 = vld [vmem:[%s4686_s1 + $0xb8] sm:$0xff]  ;;  %v127_v50 = vld [vmem:[%s4687_s2 + $0xc8] sm:$0xff] }
  0x25   :  { %2846 = vmatmul.mubr.msk.f32.gmra.mrb[6].mxu0 %vm390_vm1, %v61_v17  ;;  %v76_v48 = vld [vmem:[%s4686_s1 + $0xb0] sm:$0xff]  ;;  %v126_v51 = vld [vmem:[%s4687_s2 + $0xc0] sm:$0xff]  ;;  %v79_v53 = vld [vmem:[%s4686_s1 + $0xc8] sm:$0xff] }
  0x26   :  { %197 = vperm.xlu1 %3323, %v111_v18   ;;  %192 = vperm.xlu0 %3322, %v110_v19   ;;  %v78_v52 = vld [vmem:[%s4686_s1 + $0xc0] sm:$0xff]  ;;  %v129_v54 = vld [vmem:[%s4687_s2 + $0xd8] sm:$0xff]  ;;  %v128_v55 = vld [vmem:[%s4687_s2 + $0xd0] sm:$0xff] }
  0x27   :  { %2848 = vmatprep.mubr.msk.f32.mxu0 %vm390_vm1, %v62_v20  ;;  %v80_v56 = vld [vmem:[%s4686_s1 + $0xd0] sm:$0xff]  ;;  %v81_v57 = vld [vmem:[%s4686_s1 + $0xd8] sm:$0xff]  ;;  %v131_v58 = vld [vmem:[%s4687_s2 + $0xe8] sm:$0xff] }
  0x28   :  { %v130_v59 = vld [vmem:[%s4687_s2 + $0xe0] sm:$0xff]  ;;  %v83_v61 = vld [vmem:[%s4686_s1 + $0xe8] sm:$0xff]  ;;  %v133_v62 = vld [vmem:[%s4687_s2 + $0xf8] sm:$0xff] }
  0x29   :  { %2849 = vmatmul.mubr.msk.f32.gmra.mrb[8].mxu0 %vm390_vm1, %v63_v21  ;;  %v82_v60 = vld [vmem:[%s4686_s1 + $0xe0] sm:$0xff]  ;;  %v132_v63 = vld [vmem:[%s4687_s2 + $0xf0] sm:$0xff]  ;;  %v85_v1 = vld [vmem:[%s4686_s1 + $0xf8] sm:$0xff] }
  0x2a   :  { %207 = vperm.xlu1 %3323, %v113_v22   ;;  %202 = vperm.xlu0 %3322, %v112_v23   ;;  %v84_v0 = vld [vmem:[%s4686_s1 + $0xf0] sm:$0xff]  ;;  %v135_v2 = vld [vmem:[%s4687_s2 + $0x108] sm:$0xff]  ;;  %v134_v3 = vld [vmem:[%s4687_s2 + $0x100] sm:$0xff] }
  0x2b   :  { %2851 = vmatprep.mubr.msk.f32.mxu0 %vm390_vm1, %v64_v24  ;;  %v86_v4 = vld [vmem:[%s4686_s1 + $0x100] sm:$0xff]  ;;  %v87_v5 = vld [vmem:[%s4686_s1 + $0x108] sm:$0xff]  ;;  %v137_v6 = vld [vmem:[%s4687_s2 + $0x118] sm:$0xff] }
  0x2c   :  { %v136_v7 = vld [vmem:[%s4687_s2 + $0x110] sm:$0xff]  ;;  %v89_v9 = vld [vmem:[%s4686_s1 + $0x118] sm:$0xff]  ;;  %v139_v10 = vld [vmem:[%s4687_s2 + $0x128] sm:$0xff] }
  0x2d   :  { %2852 = vmatmul.mubr.msk.f32.gmra.mrb[10].mxu0 %vm390_vm1, %v65_v25  ;;  %v88_v8 = vld [vmem:[%s4686_s1 + $0x110] sm:$0xff]  ;;  %v138_v11 = vld [vmem:[%s4687_s2 + $0x120] sm:$0xff]  ;;  %v91_v13 = vld [vmem:[%s4686_s1 + $0x128] sm:$0xff] }
  0x2e   :  { %217 = vperm.xlu1 %3323, %v115_v26   ;;  %212 = vperm.xlu0 %3322, %v114_v27   ;;  %v90_v12 = vld [vmem:[%s4686_s1 + $0x120] sm:$0xff]  ;;  %v141_v14 = vld [vmem:[%s4687_s2 + $0x138] sm:$0xff]  ;;  %v140_v15 = vld [vmem:[%s4687_s2 + $0x130] sm:$0xff] }
  0x2f   :  { %2854 = vmatprep.mubr.msk.f32.mxu0 %vm390_vm1, %v66_v28  ;;  %v92_v16 = vld [vmem:[%s4686_s1 + $0x130] sm:$0xff]  ;;  %v93_v17 = vld [vmem:[%s4686_s1 + $0x138] sm:$0xff]  ;;  %v143_v18 = vld [vmem:[%s4687_s2 + $0x148] sm:$0xff] }
  0x30   :  { %v142_v19 = vld [vmem:[%s4687_s2 + $0x140] sm:$0xff]  ;;  %v95_v21 = vld [vmem:[%s4686_s1 + $0x148] sm:$0xff]  ;;  %v145_v22 = vld [vmem:[%s4687_s2 + $0x158] sm:$0xff] }
  0x31   :  { %2855 = vmatmul.mubr.msk.f32.gmra.mrb[12].mxu0 %vm390_vm1, %v67_v29  ;;  %v94_v20 = vld [vmem:[%s4686_s1 + $0x140] sm:$0xff]  ;;  %v144_v23 = vld [vmem:[%s4687_s2 + $0x150] sm:$0xff]  ;;  %v97_v25 = vld [vmem:[%s4686_s1 + $0x158] sm:$0xff] }
  0x32   :  { %227 = vperm.xlu1 %3323, %v117_v30   ;;  %222 = vperm.xlu0 %3322, %v116_v31   ;;  %v96_v24 = vld [vmem:[%s4686_s1 + $0x150] sm:$0xff]  ;;  %v147_v26 = vld [vmem:[%s4687_s2 + $0x168] sm:$0xff]  ;;  %v146_v27 = vld [vmem:[%s4687_s2 + $0x160] sm:$0xff] }
  0x33   :  { %2857 = vmatprep.mubr.msk.f32.mxu0 %vm390_vm1, %v68_v32  ;;  %v98_v28 = vld [vmem:[%s4686_s1 + $0x160] sm:$0xff]  ;;  %v99_v29 = vld [vmem:[%s4686_s1 + $0x168] sm:$0xff]  ;;  %v149_v30 = vld [vmem:[%s4687_s2 + $0x178] sm:$0xff] }
  0x34   :  { %v148_v31 = vld [vmem:[%s4687_s2 + $0x170] sm:$0xff]  ;;  %vm4646_vm5 = vmpackc.low %vm2361_vm3, %vm3411_vm4 }
  0x35   :  { %2858 = vmatmul.mubr.msk.f32.gmra.mrb[14].mxu0 %vm390_vm1, %v69_v33  ;;  %v100_v32 = vld [vmem:[%s4686_s1 + $0x170] sm:$0xff]  ;;  %v101_v33 = vld [vmem:[%s4686_s1 + $0x178] sm:$0xff] }
  0x36   :  { %237 = vperm.xlu1 %3323, %v119_v34   ;;  %232 = vperm.xlu0 %3322, %v118_v35   ;;  %v1053_v34 = vld [vmem:[%s4689_s4 + $0x88] sm:$0xff]  ;;  %v1052_v35 = vld [vmem:[%s4689_s4 + $0x80] sm:$0xff] }
  0x37   :  { %2860 = vmatprep.mubr.msk.f32.mxu0 %vm390_vm1, %v70_v36  ;;  %v3408_v36 = vmov 0.0|0.0  }
  0x38   :  { %3096 = vmatprep.subr.bf16.mxu1 %v3408_v36 }
  0x39   :  { %2861 = vmatmul.mubr.msk.f32.gmra.mrb[16].mxu0 %vm390_vm1, %v71_v37  ;;  %v1037_v37 = vld [vmem:[%s4689_s4 + $0x8] sm:$0xff] }
  0x3a   :  { %247 = vperm.xlu1 %3323, %v121_v38   ;;  %242 = vperm.xlu0 %3322, %v120_v39   ;;  %v1036_v38 = vld [vmem:[%s4689_s4] sm:$0xff]  ;;  %v1055_v39 = vld [vmem:[%s4689_s4 + $0x98] sm:$0xff] }
  0x3b   :  { %2863 = vmatprep.mubr.msk.f32.mxu0 %vm390_vm1, %v72_v40  ;;  %v1054_v40 = vld [vmem:[%s4689_s4 + $0x90] sm:$0xff] }
  0x3d   :  { %2864 = vmatmul.mubr.msk.f32.gmra.mrb[18].mxu0 %vm390_vm1, %v73_v41  ;;  %v1039_v41 = vld [vmem:[%s4689_s4 + $0x18] sm:$0xff] }
  0x3e   :  { %257 = vperm.xlu1 %3323, %v123_v42   ;;  %252 = vperm.xlu0 %3322, %v122_v43   ;;  %v1038_v42 = vld [vmem:[%s4689_s4 + $0x10] sm:$0xff]  ;;  %v1057_v43 = vld [vmem:[%s4689_s4 + $0xa8] sm:$0xff] }
  0x3f   :  { %2866 = vmatprep.mubr.msk.f32.mxu0 %vm390_vm1, %v74_v44  ;;  %v1056_v44 = vld [vmem:[%s4689_s4 + $0xa0] sm:$0xff] }
  0x41   :  { %2867 = vmatmul.mubr.msk.f32.gmra.mrb[20].mxu0 %vm390_vm1, %v75_v45  ;;  %v1041_v45 = vld [vmem:[%s4689_s4 + $0x28] sm:$0xff] }
  0x42   :  { %267 = vperm.xlu1 %3323, %v125_v46   ;;  %262 = vperm.xlu0 %3322, %v124_v47   ;;  %v1040_v46 = vld [vmem:[%s4689_s4 + $0x20] sm:$0xff]  ;;  %v1059_v47 = vld [vmem:[%s4689_s4 + $0xb8] sm:$0xff] }
  0x43   :  { %2869 = vmatprep.mubr.msk.f32.mxu0 %vm390_vm1, %v76_v48  ;;  %v1058_v48 = vld [vmem:[%s4689_s4 + $0xb0] sm:$0xff] }
  0x45   :  { %2870 = vmatmul.mubr.msk.f32.gmra.mrb[22].mxu0 %vm390_vm1, %v77_v49  ;;  %v1043_v49 = vld [vmem:[%s4689_s4 + $0x38] sm:$0xff] }
  0x46   :  { %277 = vperm.xlu1 %3323, %v127_v50   ;;  %272 = vperm.xlu0 %3322, %v126_v51   ;;  %v1042_v50 = vld [vmem:[%s4689_s4 + $0x30] sm:$0xff]  ;;  %v1061_v51 = vld [vmem:[%s4689_s4 + $0xc8] sm:$0xff] }
  0x47   :  { %2872 = vmatprep.mubr.msk.f32.mxu0 %vm390_vm1, %v78_v52  ;;  %v1060_v52 = vld [vmem:[%s4689_s4 + $0xc0] sm:$0xff] }
  0x49   :  { %2873 = vmatmul.mubr.msk.f32.gmra.mrb[24].mxu0 %vm390_vm1, %v79_v53  ;;  %v1045_v53 = vld [vmem:[%s4689_s4 + $0x48] sm:$0xff] }
  0x4a   :  { %287 = vperm.xlu1 %3323, %v129_v54   ;;  %282 = vperm.xlu0 %3322, %v128_v55   ;;  %v1044_v54 = vld [vmem:[%s4689_s4 + $0x40] sm:$0xff]  ;;  %v1063_v55 = vld [vmem:[%s4689_s4 + $0xd8] sm:$0xff] }
  0x4b   :  { %2875 = vmatprep.mubr.msk.f32.mxu0 %vm390_vm1, %v80_v56  ;;  %v1062_v56 = vld [vmem:[%s4689_s4 + $0xd0] sm:$0xff] }
  0x4d   :  { %2876 = vmatmul.mubr.msk.f32.gmra.mrb[26].mxu0 %vm390_vm1, %v81_v57  ;;  %v1047_v57 = vld [vmem:[%s4689_s4 + $0x58] sm:$0xff] }
  0x4e   :  { %297 = vperm.xlu1 %3323, %v131_v58   ;;  %292 = vperm.xlu0 %3322, %v130_v59   ;;  %v1046_v58 = vld [vmem:[%s4689_s4 + $0x50] sm:$0xff]  ;;  %v1065_v59 = vld [vmem:[%s4689_s4 + $0xe8] sm:$0xff] }
  0x4f   :  { %2878 = vmatprep.mubr.msk.f32.mxu0 %vm390_vm1, %v82_v60  ;;  %v1064_v60 = vld [vmem:[%s4689_s4 + $0xe0] sm:$0xff] }
  0x51   :  { %2879 = vmatmul.mubr.msk.f32.gmra.mrb[28].mxu0 %vm390_vm1, %v83_v61  ;;  %v1049_v61 = vld [vmem:[%s4689_s4 + $0x68] sm:$0xff] }
  0x52   :  { %307 = vperm.xlu1 %3323, %v133_v62   ;;  %302 = vperm.xlu0 %3322, %v132_v63   ;;  %v1048_v62 = vld [vmem:[%s4689_s4 + $0x60] sm:$0xff]  ;;  %v1067_v63 = vld [vmem:[%s4689_s4 + $0xf8] sm:$0xff] }
  0x53   :  { %2881 = vmatprep.mubr.msk.f32.mxu0 %vm390_vm1, %v84_v0  ;;  %v1066_v0 = vld [vmem:[%s4689_s4 + $0xf0] sm:$0xff] }
  0x55   :  { %2882 = vmatmul.mubr.msk.f32.gmra.mrb[30].mxu0 %vm390_vm1, %v85_v1  ;;  %v1051_v1 = vld [vmem:[%s4689_s4 + $0x78] sm:$0xff] }
  0x56   :  { %317 = vperm.xlu1 %3323, %v135_v2   ;;  %312 = vperm.xlu0 %3322, %v134_v3   ;;  %v1050_v2 = vld [vmem:[%s4689_s4 + $0x70] sm:$0xff]  ;;  %v893_v3 = vld [vmem:[%s4688_s3 + $0x8] sm:$0xff] }
  0x57   :  { %2884 = vmatprep.mubr.msk.f32.mxu0 %vm390_vm1, %v86_v4  ;;  %v1069_v4 = vld [vmem:[%s4689_s4 + $0x108] sm:$0xff]  ;;  %1388 = vmatprep.mubr.f32.mxu1 %v893_v3 }
  0x59   :  { %2885 = vmatmul.mubr.msk.f32.gmra.mrb[32].mxu0 %vm390_vm1, %v87_v5  ;;  %v1068_v5 = vld [vmem:[%s4689_s4 + $0x100] sm:$0xff] }
  0x5a   :  { %327 = vperm.xlu1 %3323, %v137_v6   ;;  %322 = vperm.xlu0 %3322, %v136_v7   ;;  %v1071_v6 = vld [vmem:[%s4689_s4 + $0x118] sm:$0xff]  ;;  %v1070_v7 = vld [vmem:[%s4689_s4 + $0x110] sm:$0xff] }
  0x5b   :  { %2887 = vmatprep.mubr.msk.f32.mxu0 %vm390_vm1, %v88_v8  ;;  %v1073_v8 = vld [vmem:[%s4689_s4 + $0x128] sm:$0xff] }
  0x5d   :  { %2888 = vmatmul.mubr.msk.f32.gmra.mrb[34].mxu0 %vm390_vm1, %v89_v9  ;;  %v1072_v9 = vld [vmem:[%s4689_s4 + $0x120] sm:$0xff] }
  0x5e   :  { %337 = vperm.xlu1 %3323, %v139_v10   ;;  %332 = vperm.xlu0 %3322, %v138_v11  }
  0x5f   :  { %2890 = vmatprep.mubr.msk.f32.mxu0 %vm390_vm1, %v90_v12  ;;  %v1075_v12 = vld [vmem:[%s4689_s4 + $0x138] sm:$0xff] }
  0x61   :  { %2891 = vmatmul.mubr.msk.f32.gmra.mrb[36].mxu0 %vm390_vm1, %v91_v13  ;;  %v1074_v13 = vld [vmem:[%s4689_s4 + $0x130] sm:$0xff] }
  0x62   :  { %347 = vperm.xlu1 %3323, %v141_v14   ;;  %342 = vperm.xlu0 %3322, %v140_v15   ;;  %v1077_v14 = vld [vmem:[%s4689_s4 + $0x148] sm:$0xff]  ;;  %v1076_v15 = vld [vmem:[%s4689_s4 + $0x140] sm:$0xff] }
  0x63   :  { %2893 = vmatprep.mubr.msk.f32.mxu0 %vm390_vm1, %v92_v16 }
  0x65   :  { %2894 = vmatmul.mubr.msk.f32.gmra.mrb[38].mxu0 %vm390_vm1, %v93_v17 }
  0x66   :  { %357 = vperm.xlu1 %3323, %v143_v18   ;;  %352 = vperm.xlu0 %3322, %v142_v19   ;;  %v1079_v18 = vld [vmem:[%s4689_s4 + $0x158] sm:$0xff]  ;;  %v1078_v19 = vld [vmem:[%s4689_s4 + $0x150] sm:$0xff] }
  0x67   :  { %2896 = vmatprep.mubr.msk.f32.mxu0 %vm390_vm1, %v94_v20 }
  0x69   :  { %2897 = vmatmul.mubr.msk.f32.gmra.mrb[40].mxu0 %vm390_vm1, %v95_v21 }
  0x6a   :  { %367 = vperm.xlu1 %3323, %v145_v22   ;;  %362 = vperm.xlu0 %3322, %v144_v23   ;;  %v1081_v22 = vld [vmem:[%s4689_s4 + $0x168] sm:$0xff]  ;;  %v1080_v23 = vld [vmem:[%s4689_s4 + $0x160] sm:$0xff] }
  0x6b   :  { %2899 = vmatprep.mubr.msk.f32.mxu0 %vm390_vm1, %v96_v24  ;;  %v1083_v24 = vld [vmem:[%s4689_s4 + $0x178] sm:$0xff] }
  0x6d   :  { %2900 = vmatmul.mubr.msk.f32.gmra.mrb[42].mxu0 %vm390_vm1, %v97_v25  ;;  %v1082_v25 = vld [vmem:[%s4689_s4 + $0x170] sm:$0xff] }
  0x6e   :  { %377 = vperm.xlu1 %3323, %v147_v26   ;;  %372 = vperm.xlu0 %3322, %v146_v27  }
  0x6f   :  { %2902 = vmatprep.mubr.msk.f32.mxu0 %vm390_vm1, %v98_v28  ;;  %v894_v28 = vld [vmem:[%s4688_s3 + $0x10] sm:$0xff] }
  0x71   :  { %2903 = vmatmul.mubr.msk.f32.gmra.mrb[44].mxu0 %vm390_vm1, %v99_v29  ;;  %v2157_v29 = vld [vmem:[%s4693_s8 + $0x8] sm:$0x3] }
  0x72   :  { %387 = vperm.xlu1 %3323, %v149_v30   ;;  %382 = vperm.xlu0 %3322, %v148_v31   ;;  %v2156_v30 = vld [vmem:[%s4693_s8] sm:$0xff] }
  0x73   :  { %2905 = vmatprep.mubr.msk.f32.mxu0 %vm390_vm1, %v100_v32 }
  0x75   :  { %2906 = vmatmul.mubr.msk.f32.gmra.mrb[46].mxu0 %vm390_vm1, %v101_v33  ;;  %v1989_v33 = vld [vmem:[%s4691_s6 + $0x8] sm:$0x3] }
  0x76   :  { %1171 = vperm.xlu1 %3323, %v1053_v34   ;;  %1166 = vperm.xlu0 %3322, %v1052_v35   ;;  %v1988_v34 = vld [vmem:[%s4691_s6] sm:$0xff] }
  0x77   :  { %2940 = vmatprep.mubr.f32.mxu0 %v894_v28 }
  0x7a   :  { %1091 = vperm.xlu1 %3323, %v1037_v37   ;;  %1086 = vperm.xlu0 %3322, %v1036_v38  }
  0x7e   :  { %1181 = vperm.xlu1 %3323, %v1055_v39   ;;  %1176 = vperm.xlu0 %3322, %v1054_v40  }
  0x82   :  { %1101 = vperm.xlu1 %3323, %v1039_v41   ;;  %1096 = vperm.xlu0 %3322, %v1038_v42  }
  0x86   :  { %1191 = vperm.xlu1 %3323, %v1057_v43   ;;  %1186 = vperm.xlu0 %3322, %v1056_v44  }
  0x8a   :  { %1111 = vperm.xlu1 %3323, %v1041_v45   ;;  %1106 = vperm.xlu0 %3322, %v1040_v46  }
  0x8e   :  { %1201 = vperm.xlu1 %3323, %v1059_v47   ;;  %1196 = vperm.xlu0 %3322, %v1058_v48  }
  0x92   :  { %1121 = vperm.xlu1 %3323, %v1043_v49   ;;  %1116 = vperm.xlu0 %3322, %v1042_v50  }
  0x95   :  { %v163_v10 = vpop.permute.xlu1 %162  ;;  %v153_v11 = vpop.permute.xlu0 %152 }
  0x96   :  { %1211 = vperm.xlu1 %3323, %v1061_v51   ;;  %1206 = vperm.xlu0 %3322, %v1060_v52  }
  0x99   :  { %v168_v16 = vpop.permute.xlu1 %167  ;;  %v158_v17 = vpop.permute.xlu0 %157 }
  0x9a   :  { %1131 = vperm.xlu1 %3323, %v1045_v53   ;;  %1126 = vperm.xlu0 %3322, %v1044_v54  }
  0x9d   :  { %v178_v20 = vpop.permute.xlu1 %177  ;;  %v173_v21 = vpop.permute.xlu0 %172 }
  0x9e   :  { %1221 = vperm.xlu1 %3323, %v1063_v55   ;;  %1216 = vperm.xlu0 %3322, %v1062_v56  }
  0xa1   :  { %v188_v26 = vpop.permute.xlu1 %187  ;;  %v183_v27 = vpop.permute.xlu0 %182 }
  0xa2   :  { %1141 = vperm.xlu1 %3323, %v1047_v57   ;;  %1136 = vperm.xlu0 %3322, %v1046_v58  }
  0xa5   :  { %v198_v31 = vpop.permute.xlu1 %197  ;;  %v193_v32 = vpop.permute.xlu0 %192 }
  0xa6   :  { %1231 = vperm.xlu1 %3323, %v1065_v59   ;;  %1226 = vperm.xlu0 %3322, %v1064_v60  }
  0xa9   :  { %v208_v35 = vpop.permute.xlu1 %207  ;;  %v203_v37 = vpop.permute.xlu0 %202 }
  0xaa   :  { %1151 = vperm.xlu1 %3323, %v1049_v61   ;;  %1146 = vperm.xlu0 %3322, %v1048_v62  }
  0xad   :  { %v3988_v38 = vpop.permute.xlu1 %217  ;;  %v3990_v39 = vpop.permute.xlu0 %212 }
  0xae   :  { %1241 = vperm.xlu1 %3323, %v1067_v63   ;;  %1236 = vperm.xlu0 %3322, %v1066_v0  }
  0xb1   :  { %v3992_v40 = vpop.permute.xlu1 %227  ;;  %v3994_v41 = vpop.permute.xlu0 %222 }
  0xb2   :  { %1161 = vperm.xlu1 %3323, %v1051_v1   ;;  %1156 = vperm.xlu0 %3322, %v1050_v2  }
  0xb5   :  { %v3996_v45 = vpop.permute.xlu1 %237  ;;  %v3998_v47 = vpop.permute.xlu0 %232 }
  0xb6   :  { %1251 = vperm.xlu1 %3323, %v1069_v4   ;;  %1246 = vperm.xlu0 %3322, %v1068_v5  }
  0xb9   :  { %v4000_v56 = vpop.permute.xlu1 %247  ;;  %v4002_v59 = vpop.permute.xlu0 %242 }
  0xba   :  { %1261 = vperm.xlu1 %3323, %v1071_v6   ;;  %1256 = vperm.xlu0 %3322, %v1070_v7  }
  0xbd   :  { %v4006_v5 = vpop.permute.xlu1 %257 }
  0xbe   :  { %1271 = vperm.xlu1 %3323, %v1073_v8   ;;  %1266 = vperm.xlu0 %3322, %v1072_v9   ;;  %v4008_v8 = vpop.permute.xlu0 %252 }
  0xc2   :  { %1281 = vperm.xlu1 %3323, %v1075_v12   ;;  %1276 = vperm.xlu0 %3322, %v1074_v13  }
  0xc6   :  { %1291 = vperm.xlu1 %3323, %v1077_v14   ;;  %1286 = vperm.xlu0 %3322, %v1076_v15  }
  0xca   :  { %1301 = vperm.xlu1 %3323, %v1079_v18   ;;  %1296 = vperm.xlu0 %3322, %v1078_v19  }
  0xce   :  { %1311 = vperm.xlu1 %3323, %v1081_v22   ;;  %1306 = vperm.xlu0 %3322, %v1080_v23  }
  0xd2   :  { %1321 = vperm.xlu1 %3323, %v1083_v24   ;;  %1316 = vperm.xlu0 %3322, %v1082_v25  }
  0xd6   :  { %2165 = vperm.xlu1 %3323, %v2157_v29   ;;  %2160 = vperm.xlu0 %3322, %v2156_v30  }
  0xda   :  { %1997 = vperm.xlu1 %3323, %v1989_v33   ;;  %1992 = vperm.xlu0 %3322, %v1988_v34  }
  0xec   :  { %v2838_v42 = vpop.f32.mrb[0].mxu0 }
  0xed   :  { %v611_v43 = vadd.f32 %v2838_v42, %v158_v17  ;;  %v605_v44 = vpop.f32.mrb[1].mxu0  ;;  %v4011_v17 = vpop.permute.xlu1 %267 }
  0xee   :  { %v606_v46 = vadd.f32 %v605_v44, %v153_v11 }
  0xef   :  { %v845_v48 = vmax.f32 %v611_v43, 0.0 }
  0xf0   :  { %v844_v49 = vmax.f32 %v606_v46, 0.0  ;;  %v2841_v50 = vpop.f32.mrb[2].mxu0 }
  0xf1   :  { %v621_v51 = vadd.f32 %v2841_v50, %v168_v16  ;;  %v615_v52 = vpop.f32.mrb[3].mxu0  ;;  %v278_v30 = vpop.permute.xlu1 %277 }
  0xf2   :  { %v616_v53 = vadd.f32 %v615_v52, %v163_v10  ;;  %v3097_v54 = vpack.c.bf16 %v845_v48, %v844_v49 }
  0xf3   :  { %v847_v55 = vmax.f32 %v621_v51, 0.0 }
  0xf4   :  { %v846_v57 = vmax.f32 %v616_v53, 0.0  ;;  %v2844_v58 = vpop.f32.mrb[4].mxu0  ;;  %3098 = vmatpush1.bf16.msra.mxu1 %v3097_v54 }
  0xf5   :  { %v631_v60 = vadd.f32 %v2844_v58, %v178_v20  ;;  %v625_v61 = vpop.f32.mrb[5].mxu0  ;;  %3099 = vmatprep.subr.bf16.mxu1 %v3408_v36  ;;  %v4013_v20 = vpop.permute.xlu0 %262 }
  0xf6   :  { %v3100_v62 = vpack.c.bf16 %v847_v55, %v846_v57  ;;  %v626_v63 = vadd.f32 %v625_v61, %v173_v21  ;;  %v288_v48 = vpop.permute.xlu1 %287 }
  0xf7   :  { %v849_v0 = vmax.f32 %v631_v60, 0.0 }
  0xf8   :  { %v848_v1 = vmax.f32 %v626_v63, 0.0  ;;  %v2847_v2 = vpop.f32.mrb[6].mxu0  ;;  %3101 = vmatpush1.bf16.msra.mxu1 %v3100_v62 }
  0xf9   :  { %v641_v3 = vadd.f32 %v2847_v2, %v188_v26  ;;  %v635_v4 = vpop.f32.mrb[7].mxu0  ;;  %3102 = vmatprep.subr.bf16.mxu1 %v3408_v36  ;;  %v273_v33 = vpop.permute.xlu0 %272 }
  0xfa   :  { %v3103_v6 = vpack.c.bf16 %v849_v0, %v848_v1  ;;  %v636_v7 = vadd.f32 %v635_v4, %v183_v27  ;;  %v298_v60 = vpop.permute.xlu1 %297 }
  0xfb   :  { %v851_v9 = vmax.f32 %v641_v3, 0.0 }
  0xfc   :  { %v850_v10 = vmax.f32 %v636_v7, 0.0  ;;  %v2850_v11 = vpop.f32.mrb[8].mxu0  ;;  %3104 = vmatpush1.bf16.msra.mxu1 %v3103_v6 }
  0xfd   :  { %v651_v12 = vadd.f32 %v2850_v11, %v198_v31  ;;  %v645_v13 = vpop.f32.mrb[9].mxu0  ;;  %3105 = vmatprep.subr.bf16.mxu1 %v3408_v36  ;;  %v283_v51 = vpop.permute.xlu0 %282 }
  0xfe   :  { %v3106_v14 = vpack.c.bf16 %v851_v9, %v850_v10  ;;  %v646_v15 = vadd.f32 %v645_v13, %v193_v32  ;;  %v308_v6 = vpop.permute.xlu1 %307 }
  0xff   :  { %v853_v16 = vmax.f32 %v651_v12, 0.0 }
 0x100   :  { %v852_v18 = vmax.f32 %v646_v15, 0.0  ;;  %v2853_v19 = vpop.f32.mrb[10].mxu0  ;;  %3107 = vmatpush1.bf16.msra.mxu1 %v3106_v14 }
 0x101   :  { %v661_v21 = vadd.f32 %v2853_v19, %v208_v35  ;;  %v655_v22 = vpop.f32.mrb[11].mxu0  ;;  %3108 = vmatprep.subr.bf16.mxu1 %v3408_v36 }
 0x102   :  { %v3109_v23 = vpack.c.bf16 %v853_v16, %v852_v18  ;;  %v656_v24 = vadd.f32 %v655_v22, %v203_v37  ;;  %v318_v18 = vpop.permute.xlu1 %317 }
 0x103   :  { %v855_v25 = vmax.f32 %v661_v21, 0.0 }
 0x104   :  { %v854_v26 = vmax.f32 %v656_v24, 0.0  ;;  %v2856_v27 = vpop.f32.mrb[12].mxu0  ;;  %3110 = vmatpush1.bf16.msra.mxu1 %v3109_v23 }
 0x105   :  { %v671_v28 = vadd.f32 %v2856_v27, %v3988_v38  ;;  %v665_v29 = vpop.f32.mrb[13].mxu0  ;;  %3111 = vmatprep.subr.bf16.mxu1 %v3408_v36 }
 0x106   :  { %v3112_v31 = vpack.c.bf16 %v855_v25, %v854_v26  ;;  %v666_v32 = vadd.f32 %v665_v29, %v3990_v39  ;;  %v328_v29 = vpop.permute.xlu1 %327 }
 0x107   :  { %v857_v34 = vmax.f32 %v671_v28, 0.0 }
 0x108   :  { %v856_v35 = vmax.f32 %v666_v32, 0.0  ;;  %v2859_v42 = vpop.f32.mrb[14].mxu0  ;;  %3113 = vmatpush1.bf16.msra.mxu1 %v3112_v31 }
 0x109   :  { %v681_v37 = vadd.f32 %v2859_v42, %v3992_v40  ;;  %v675_v43 = vpop.f32.mrb[15].mxu0  ;;  %3114 = vmatprep.subr.bf16.mxu1 %v3408_v36 }
 0x10a   :  { %v3115_v44 = vpack.c.bf16 %v857_v34, %v856_v35  ;;  %v676_v38 = vadd.f32 %v675_v43, %v3994_v41 }
 0x10b   :  { %v859_v46 = vmax.f32 %v681_v37, 0.0 }
 0x10c   :  { %v858_v49 = vmax.f32 %v676_v38, 0.0  ;;  %v2862_v50 = vpop.f32.mrb[16].mxu0  ;;  %3116 = vmatpush1.bf16.msra.mxu1 %v3115_v44 }
 0x10d   :  { %v691_v39 = vadd.f32 %v2862_v50, %v3996_v45  ;;  %v685_v52 = vpop.f32.mrb[17].mxu0  ;;  %3117 = vmatprep.subr.bf16.mxu1 %v3408_v36  ;;  %v293_v45 = vpop.permute.xlu0 %292 }
 0x10e   :  { %v3118_v53 = vpack.c.bf16 %v859_v46, %v858_v49  ;;  %v686_v40 = vadd.f32 %v685_v52, %v3998_v47 }
 0x10f   :  { %v861_v54 = vmax.f32 %v691_v39, 0.0 }
 0x110   :  { %v860_v55 = vmax.f32 %v686_v40, 0.0  ;;  %v2865_v57 = vpop.f32.mrb[18].mxu0  ;;  %3119 = vmatpush1.bf16.msra.mxu1 %v3118_v53 }
 0x111   :  { %v701_v41 = vadd.f32 %v2865_v57, %v4000_v56  ;;  %v695_v58 = vpop.f32.mrb[19].mxu0  ;;  %3120 = vmatprep.subr.bf16.mxu1 %v3408_v36  ;;  %v303_v10 = vpop.permute.xlu0 %302 }
 0x112   :  { %v3121_v61 = vpack.c.bf16 %v861_v54, %v860_v55  ;;  %v696_v62 = vadd.f32 %v695_v58, %v4002_v59 }
 0x113   :  { %v863_v63 = vmax.f32 %v701_v41, 0.0 }
 0x114   :  { %v862_v0 = vmax.f32 %v696_v62, 0.0  ;;  %v2868_v1 = vpop.f32.mrb[20].mxu0  ;;  %3122 = vmatpush1.bf16.msra.mxu1 %v3121_v61  ;;  %v892_v62 = vld [vmem:[%s4688_s3] sm:$0xff] }
 0x115   :  { %v711_v47 = vadd.f32 %v2868_v1, %v4006_v5  ;;  %v705_v2 = vpop.f32.mrb[21].mxu0  ;;  %3123 = vmatprep.subr.bf16.mxu1 %v3408_v36  ;;  %v313_v22 = vpop.permute.xlu0 %312  ;;  %v896_v1 = vld [vmem:[%s4688_s3 + $0x20] sm:$0xff] }
 0x116   :  { %v3124_v3 = vpack.c.bf16 %v863_v63, %v862_v0  ;;  %v706_v56 = vadd.f32 %v705_v2, %v4008_v8 }
 0x117   :  { %v865_v4 = vmax.f32 %v711_v47, 0.0 }
 0x118   :  { %v864_v7 = vmax.f32 %v706_v56, 0.0  ;;  %v2871_v9 = vpop.f32.mrb[22].mxu0  ;;  %3125 = vmatpush1.bf16.msra.mxu1 %v3124_v3 }
 0x119   :  { %v721_v59 = vadd.f32 %v2871_v9, %v4011_v17  ;;  %v715_v11 = vpop.f32.mrb[23].mxu0  ;;  %3126 = vmatprep.subr.bf16.mxu1 %v3408_v36  ;;  %v323_v32 = vpop.permute.xlu0 %322 }
 0x11a   :  { %v3127_v12 = vpack.c.bf16 %v865_v4, %v864_v7  ;;  %v716_v5 = vadd.f32 %v715_v11, %v4013_v20 }
 0x11b   :  { %v867_v13 = vmax.f32 %v721_v59, 0.0 }
 0x11c   :  { %v866_v14 = vmax.f32 %v716_v5, 0.0  ;;  %v2874_v15 = vpop.f32.mrb[24].mxu0  ;;  %3128 = vmatpush1.bf16.msra.mxu1 %v3127_v12 }
 0x11d   :  { %v731_v16 = vadd.f32 %v2874_v15, %v278_v30  ;;  %v725_v8 = vpop.f32.mrb[25].mxu0  ;;  %3129 = vmatprep.subr.bf16.mxu1 %v3408_v36 }
 0x11e   :  { %v3130_v19 = vpack.c.bf16 %v867_v13, %v866_v14  ;;  %v726_v21 = vadd.f32 %v725_v8, %v273_v33 }
 0x11f   :  { %v869_v23 = vmax.f32 %v731_v16, 0.0  ;;  %v898_v16 = vld [vmem:[%s4688_s3 + $0x30] sm:$0xff] }
 0x120   :  { %v868_v17 = vmax.f32 %v726_v21, 0.0  ;;  %v2877_v24 = vpop.f32.mrb[26].mxu0  ;;  %3131 = vmatpush1.bf16.msra.mxu1 %v3130_v19  ;;  %v902_v19 = vld [vmem:[%s4688_s3 + $0x50] sm:$0xff] }
 0x121   :  { %v741_v25 = vadd.f32 %v2877_v24, %v288_v48  ;;  %v735_v26 = vpop.f32.mrb[27].mxu0  ;;  %3132 = vmatprep.subr.bf16.mxu1 %v3408_v36  ;;  %v338_v48 = vpop.permute.xlu1 %337 }
 0x122   :  { %v3133_v20 = vpack.c.bf16 %v869_v23, %v868_v17  ;;  %v736_v27 = vadd.f32 %v735_v26, %v283_v51  ;;  %v333_v51 = vpop.permute.xlu0 %332  ;;  %v901_v26 = vld [vmem:[%s4688_s3 + $0x48] sm:$0xff] }
 0x123   :  { %v871_v28 = vmax.f32 %v741_v25, 0.0 }
 0x124   :  { %v870_v30 = vmax.f32 %v736_v27, 0.0  ;;  %v2880_v31 = vpop.f32.mrb[28].mxu0  ;;  %3134 = vmatpush1.bf16.msra.mxu1 %v3133_v20 }
 0x125   :  { %v751_v34 = vadd.f32 %v2880_v31, %v298_v60  ;;  %v745_v35 = vpop.f32.mrb[29].mxu0  ;;  %3135 = vmatprep.subr.bf16.mxu1 %v3408_v36  ;;  %v348_v58 = vpop.permute.xlu1 %347 }
 0x126   :  { %v3136_v33 = vpack.c.bf16 %v871_v28, %v870_v30  ;;  %v746_v42 = vadd.f32 %v745_v35, %v293_v45  ;;  %v343_v45 = vpop.permute.xlu0 %342 }
 0x127   :  { %v873_v37 = vmax.f32 %v751_v34, 0.0 }
 0x128   :  { %v872_v43 = vmax.f32 %v746_v42, 0.0  ;;  %v2883_v44 = vpop.f32.mrb[30].mxu0  ;;  %3137 = vmatpush1.bf16.msra.mxu1 %v3136_v33  ;;  %v904_v33 = vld [vmem:[%s4688_s3 + $0x60] sm:$0xff] }
 0x129   :  { %v761_v38 = vadd.f32 %v2883_v44, %v308_v6  ;;  %v755_v46 = vpop.f32.mrb[31].mxu0  ;;  %3138 = vmatprep.subr.bf16.mxu1 %v3408_v36  ;;  %v895_v6 = vld [vmem:[%s4688_s3 + $0x18] sm:$0xff]  ;;  %v358_v59 = vpop.permute.xlu1 %357 }
 0x12a   :  { %v3139_v49 = vpack.c.bf16 %v873_v37, %v872_v43  ;;  %v756_v50 = vadd.f32 %v755_v46, %v303_v10  ;;  %v899_v10 = vld [vmem:[%s4688_s3 + $0x38] sm:$0xff]  ;;  %v353_v5 = vpop.permute.xlu0 %352  ;;  %v908_v43 = vld [vmem:[%s4688_s3 + $0x80] sm:$0xff] }
 0x12b   :  { %v875_v39 = vmax.f32 %v761_v38, 0.0 }
 0x12c   :  { %v874_v52 = vmax.f32 %v756_v50, 0.0  ;;  %v2886_v53 = vpop.f32.mrb[32].mxu0  ;;  %3140 = vmatpush1.bf16.msra.mxu1 %v3139_v49 }
 0x12d   :  { %v771_v40 = vadd.f32 %v2886_v53, %v318_v18  ;;  %v765_v54 = vpop.f32.mrb[33].mxu0  ;;  %3141 = vmatprep.subr.bf16.mxu1 %v3408_v36  ;;  %v368_v17 = vpop.permute.xlu1 %367 }
 0x12e   :  { %v3142_v55 = vpack.c.bf16 %v875_v39, %v874_v52  ;;  %v766_v57 = vadd.f32 %v765_v54, %v313_v22  ;;  %v363_v20 = vpop.permute.xlu0 %362  ;;  %v907_v39 = vld [vmem:[%s4688_s3 + $0x78] sm:$0xff] }
 0x12f   :  { %v877_v41 = vmax.f32 %v771_v40, 0.0  ;;  %v911_v40 = vld [vmem:[%s4688_s3 + $0x98] sm:$0xff] }
 0x130   :  { %v876_v60 = vmax.f32 %v766_v57, 0.0  ;;  %v2889_v61 = vpop.f32.mrb[34].mxu0  ;;  %3143 = vmatpush1.bf16.msra.mxu1 %v3142_v55 }
 0x131   :  { %v781_v63 = vadd.f32 %v2889_v61, %v328_v29  ;;  %v775_v0 = vpop.f32.mrb[35].mxu0  ;;  %v905_v29 = vld [vmem:[%s4688_s3 + $0x68] sm:$0xff]  ;;  %v378_v44 = vpop.permute.xlu1 %377  ;;  %v910_v61 = vld [vmem:[%s4688_s3 + $0x90] sm:$0xff] }
 0x132   :  { %v3144_v47 = vpack.c.bf16 %v877_v41, %v876_v60  ;;  %v776_v2 = vadd.f32 %v775_v0, %v323_v32  ;;  %v914_v0 = vld [vmem:[%s4688_s3 + $0xb0] sm:$0xff] }
 0x133   :  { %v879_v3 = vmax.f32 %v781_v63, 0.0  ;;  %1389 = vmatmul.mubr.f32.vlgmr.msra.gmra.mrb[0].mxu1 %v892_v62 }
 0x134   :  { %v878_v56 = vmax.f32 %v776_v2, 0.0  ;;  %v2892_v4 = vpop.f32.mrb[36].mxu0  ;;  %3145 = vmatprep.subr.bf16.mxu0 %v3144_v47  ;;  %1393 = vmatprep.mubr.f32.mxu1 %v896_v1 }
 0x135   :  { %v791_v7 = vadd.f32 %v2892_v4, %v338_v48  ;;  %v785_v9 = vpop.f32.mrb[37].mxu0  ;;  %3147 = vmatpush3.bf16.msra.mxu0 %v3144_v47  ;;  %v373_v48 = vpop.permute.xlu0 %372  ;;  %v917_v4 = vld [vmem:[%s4688_s3 + $0xc8] sm:$0xff] }
 0x136   :  { %v3148_v11 = vpack.c.bf16 %v879_v3, %v878_v56  ;;  %v786_v12 = vadd.f32 %v785_v9, %v333_v51  ;;  %v388_v41 = vpop.permute.xlu1 %387  ;;  %v913_v56 = vld [vmem:[%s4688_s3 + $0xa8] sm:$0xff] }
 0x137   :  { %v881_v13 = vmax.f32 %v791_v7, 0.0  ;;  %1394 = vmatmul.mubr.f32.gmra.mrb[2].mxu1 %v895_v6  ;;  %v916_v7 = vld [vmem:[%s4688_s3 + $0xc0] sm:$0xff]  ;;  %v897_v9 = vld [vmem:[%s4688_s3 + $0x28] sm:$0xff] }
 0x138   :  { %v880_v14 = vmax.f32 %v786_v12, 0.0  ;;  %v2895_v15 = vpop.f32.mrb[38].mxu0  ;;  %3149 = vmatprep.subr.bf16.mxu0 %v3148_v11  ;;  %1398 = vmatprep.mubr.f32.mxu1 %v899_v10  ;;  %v920_v10 = vld [vmem:[%s4688_s3 + $0xe0] sm:$0xff]  ;;  %v903_v12 = vld [vmem:[%s4688_s3 + $0x58] sm:$0xff] }
 0x139   :  { %v801_v8 = vadd.f32 %v2895_v15, %v348_v58  ;;  %v795_v18 = vpop.f32.mrb[39].mxu0  ;;  %3151 = vmatpush3.bf16.msra.mxu0 %v3148_v11  ;;  %v383_v62 = vpop.permute.xlu0 %382  ;;  %v919_v11 = vld [vmem:[%s4688_s3 + $0xd8] sm:$0xff]  ;;  %v909_v15 = vld [vmem:[%s4688_s3 + $0x88] sm:$0xff] }
 0x13a   :  { %v3152_v21 = vpack.c.bf16 %v881_v13, %v880_v14  ;;  %v796_v22 = vadd.f32 %v795_v18, %v343_v45  ;;  %v906_v13 = vld [vmem:[%s4688_s3 + $0x70] sm:$0xff]  ;;  %v925_v18 = vld [vmem:[%s4688_s3 + $0x108] sm:$0xff] }
 0x13b   :  { %v883_v23 = vmax.f32 %v801_v8, 0.0  ;;  %1399 = vmatmul.mubr.f32.gmra.mrb[4].mxu1 %v898_v16  ;;  %v922_v14 = vld [vmem:[%s4688_s3 + $0xf0] sm:$0xff]  ;;  %v912_v8 = vld [vmem:[%s4688_s3 + $0xa0] sm:$0xff] }
 0x13c   :  { %v882_v24 = vmax.f32 %v796_v22, 0.0  ;;  %v2898_v25 = vpop.f32.mrb[40].mxu0  ;;  %3153 = vmatprep.subr.bf16.mxu0 %v3152_v21  ;;  %1403 = vmatprep.mubr.f32.mxu1 %v902_v19  ;;  %v926_v16 = vld [vmem:[%s4688_s3 + $0x110] sm:$0xff]  ;;  %v915_v19 = vld [vmem:[%s4688_s3 + $0xb8] sm:$0xff] }
 0x13d   :  { %v811_v27 = vadd.f32 %v2898_v25, %v358_v59  ;;  %v805_v28 = vpop.f32.mrb[41].mxu0  ;;  %3155 = vmatpush3.bf16.msra.mxu0 %v3152_v21  ;;  %v900_v59 = vld [vmem:[%s4688_s3 + $0x40] sm:$0xff]  ;;  %v929_v21 = vld [vmem:[%s4688_s3 + $0x128] sm:$0xff]  ;;  %v918_v22 = vld [vmem:[%s4688_s3 + $0xd0] sm:$0xff] }
 0x13e   :  { %v3156_v30 = vpack.c.bf16 %v883_v23, %v882_v24  ;;  %v806_v31 = vadd.f32 %v805_v28, %v353_v5  ;;  %v923_v5 = vld [vmem:[%s4688_s3 + $0xf8] sm:$0xff]  ;;  %v928_v23 = vld [vmem:[%s4688_s3 + $0x120] sm:$0xff]  ;;  %v930_v28 = vld [vmem:[%s4688_s3 + $0x130] sm:$0xff] }
 0x13f   :  { %v885_v32 = vmax.f32 %v811_v27, 0.0  ;;  %1404 = vmatmul.mubr.f32.gmra.mrb[6].mxu1 %v901_v26  ;;  %v932_v24 = vld [vmem:[%s4688_s3 + $0x140] sm:$0xff]  ;;  %v931_v26 = vld [vmem:[%s4688_s3 + $0x138] sm:$0xff] }
 0x140   :  { %v884_v34 = vmax.f32 %v806_v31, 0.0  ;;  %v2901_v35 = vpop.f32.mrb[42].mxu0  ;;  %3157 = vmatprep.subr.bf16.mxu0 %v3156_v30  ;;  %1408 = vmatprep.mubr.f32.mxu1 %v905_v29  ;;  %v924_v25 = vld [vmem:[%s4688_s3 + $0x100] sm:$0xff]  ;;  %v935_v27 = vld [vmem:[%s4688_s3 + $0x158] sm:$0xff]  ;;  %v934_v29 = vld [vmem:[%s4688_s3 + $0x150] sm:$0xff] }
 0x141   :  { %v821_v42 = vadd.f32 %v2901_v35, %v368_v17  ;;  %v815_v37 = vpop.f32.mrb[43].mxu0  ;;  %3159 = vmatpush3.bf16.msra.mxu0 %v3156_v30  ;;  %v921_v17 = vld [vmem:[%s4688_s3 + $0xe8] sm:$0xff]  ;;  %v938_v31 = vld [vmem:[%s4688_s3 + $0x170] sm:$0xff]  ;;  %v939_v35 = vld [vmem:[%s4688_s3 + $0x178] sm:$0xff] }
 0x142   :  { %v3160_v38 = vpack.c.bf16 %v885_v32, %v884_v34  ;;  %v816_v46 = vadd.f32 %v815_v37, %v363_v20  ;;  %v927_v20 = vld [vmem:[%s4688_s3 + $0x118] sm:$0xff]  ;;  %v933_v30 = vld [vmem:[%s4688_s3 + $0x148] sm:$0xff]  ;;  %v936_v32 = vld [vmem:[%s4688_s3 + $0x160] sm:$0xff] }
 0x143   :  { %v887_v49 = vmax.f32 %v821_v42, 0.0  ;;  %1409 = vmatmul.mubr.f32.gmra.mrb[8].mxu1 %v904_v33  ;;  %v937_v34 = vld [vmem:[%s4688_s3 + $0x168] sm:$0xff]  ;;  %v942_v42 = vld [vmem:[%s4688_s3 + $0x190] sm:$0xff]  ;;  %v940_v37 = vld [vmem:[%s4688_s3 + $0x180] sm:$0xff] }
 0x144   :  { %v886_v50 = vmax.f32 %v816_v46, 0.0  ;;  %v2904_v51 = vpop.f32.mrb[44].mxu0  ;;  %3161 = vmatprep.subr.bf16.mxu0 %v3160_v38  ;;  %1413 = vmatprep.mubr.f32.mxu1 %v908_v43  ;;  %v941_v33 = vld [vmem:[%s4688_s3 + $0x188] sm:$0xff]  ;;  %v943_v46 = vld [vmem:[%s4688_s3 + $0x198] sm:$0xff] }
 0x145   :  { %v831_v52 = vadd.f32 %v2904_v51, %v378_v44  ;;  %v825_v53 = vpop.f32.mrb[45].mxu0  ;;  %3163 = vmatpush3.bf16.msra.mxu0 %v3160_v38  ;;  %v945_v43 = vld [vmem:[%s4688_s3 + $0x1a8] sm:$0xff]  ;;  %v944_v44 = vld [vmem:[%s4688_s3 + $0x1a0] sm:$0xff]  ;;  %v946_v51 = vld [vmem:[%s4688_s3 + $0x1b0] sm:$0xff] }
 0x146   :  { %v3164_v54 = vpack.c.bf16 %v887_v49, %v886_v50  ;;  %v826_v55 = vadd.f32 %v825_v53, %v373_v48  ;;  %v948_v38 = vld [vmem:[%s4688_s3 + $0x1c0] sm:$0xff]  ;;  %v947_v48 = vld [vmem:[%s4688_s3 + $0x1b8] sm:$0xff]  ;;  %v954_v50 = vld [vmem:[%s4688_s3 + $0x1f0] sm:$0xff] }
 0x147   :  { %v889_v57 = vmax.f32 %v831_v52, 0.0  ;;  %1414 = vmatmul.mubr.f32.gmra.mrb[10].mxu1 %v907_v39  ;;  %v951_v49 = vld [vmem:[%s4688_s3 + $0x1d8] sm:$0xff]  ;;  %v950_v39 = vld [vmem:[%s4688_s3 + $0x1d0] sm:$0xff]  ;;  %v957_v52 = vld [vmem:[%s4688_s3 + $0x208] sm:$0xff] }
 0x148   :  { %v888_v58 = vmax.f32 %v826_v55, 0.0  ;;  %v2907_v60 = vpop.f32.mrb[46].mxu0  ;;  %3165 = vmatprep.subr.bf16.mxu0 %v3164_v54  ;;  %1418 = vmatprep.mubr.f32.mxu1 %v911_v40  ;;  %v960_v53 = vld [vmem:[%s4688_s3 + $0x220] sm:$0xff]  ;;  %v949_v40 = vld [vmem:[%s4688_s3 + $0x1c8] sm:$0xff]  ;;  %v963_v55 = vld [vmem:[%s4688_s3 + $0x238] sm:$0xff] }
 0x149   :  { %v841_v45 = vadd.f32 %v2907_v60, %v388_v41  ;;  %v835_v63 = vpop.f32.mrb[47].mxu0  ;;  %3167 = vmatpush3.bf16.msra.mxu0 %v3164_v54  ;;  %v953_v54 = vld [vmem:[%s4688_s3 + $0x1e8] sm:$0xff]  ;;  %v952_v41 = vld [vmem:[%s4688_s3 + $0x1e0] sm:$0xff] }
 0x14a   :  { %v3168_v1 = vpack.c.bf16 %v889_v57, %v888_v58  ;;  %v836_v47 = vadd.f32 %v835_v63, %v383_v62  ;;  %v966_v57 = vld [vmem:[%s4688_s3 + $0x250] sm:$0xff]  ;;  %v956_v58 = vld [vmem:[%s4688_s3 + $0x200] sm:$0xff]  ;;  %v969_v60 = vld [vmem:[%s4688_s3 + $0x268] sm:$0xff] }
 0x14b   :  { %v891_v2 = vmax.f32 %v841_v45, 0.0  ;;  %1419 = vmatmul.mubr.f32.gmra.mrb[12].mxu1 %v910_v61  ;;  %v972_v61 = vld [vmem:[%s4688_s3 + $0x280] sm:$0xff]  ;;  %v955_v62 = vld [vmem:[%s4688_s3 + $0x1f8] sm:$0xff] }
 0x14c   :  { %v890_v3 = vmax.f32 %v836_v47, 0.0  ;;  %3169 = vmatprep.subr.bf16.mxu0 %v3168_v1  ;;  %1423 = vmatprep.mubr.f32.mxu1 %v914_v0  ;;  %v959_v45 = vld [vmem:[%s4688_s3 + $0x218] sm:$0xff]  ;;  %v978_v0 = vld [vmem:[%s4688_s3 + $0x2b0] sm:$0xff] }
 0x14d   :  { %3171 = vmatpush3.bf16.msra.mxu0 %v3168_v1  ;;  %v975_v63 = vld [vmem:[%s4688_s3 + $0x298] sm:$0xff]  ;;  %v958_v1 = vld [vmem:[%s4688_s3 + $0x210] sm:$0xff] }
 0x14e   :  { %v3172_v6 = vpack.c.bf16 %v891_v2, %v890_v3  ;;  %v962_v47 = vld [vmem:[%s4688_s3 + $0x230] sm:$0xff]  ;;  %v981_v2 = vld [vmem:[%s4688_s3 + $0x2c8] sm:$0xff]  ;;  %v984_v3 = vld [vmem:[%s4688_s3 + $0x2e0] sm:$0xff] }
 0x14f   :  { %1424 = vmatmul.mubr.f32.gmra.mrb[14].mxu1 %v913_v56  ;;  %v961_v56 = vld [vmem:[%s4688_s3 + $0x228] sm:$0xff] }
 0x150   :  { %3173 = vmatprep.subr.bf16.mxu0 %v3172_v6  ;;  %1428 = vmatprep.mubr.f32.mxu1 %v917_v4  ;;  %v965_v4 = vld [vmem:[%s4688_s3 + $0x248] sm:$0xff] }
 0x151   :  { %3175 = vmatpush3.bf16.msra.mxu0 %v3172_v6  ;;  %v987_v6 = vld [vmem:[%s4688_s3 + $0x2f8] sm:$0xff] }
 0x153   :  { %1429 = vmatmul.mubr.f32.gmra.mrb[16].mxu1 %v916_v7  ;;  %v990_v7 = vld [vmem:[%s4688_s3 + $0x310] sm:$0xff] }
 0x154   :  { %2941 = vmatmul.mubr.f32.vlgmr.msra.gmra.mrb[48].mxu0 %v897_v9  ;;  %1433 = vmatprep.mubr.f32.mxu1 %v920_v10  ;;  %v964_v9 = vld [vmem:[%s4688_s3 + $0x240] sm:$0xff] }
 0x155   :  { %2943 = vmatprep.mubr.f32.mxu0 %v900_v59  ;;  %v968_v10 = vld [vmem:[%s4688_s3 + $0x260] sm:$0xff]  ;;  %v993_v59 = vld [vmem:[%s4688_s3 + $0x328] sm:$0xff] }
 0x157   :  { %1434 = vmatmul.mubr.f32.gmra.mrb[18].mxu1 %v919_v11  ;;  %v996_v11 = vld [vmem:[%s4688_s3 + $0x340] sm:$0xff] }
 0x158   :  { %2944 = vmatmul.mubr.f32.gmra.mrb[50].mxu0 %v903_v12  ;;  %1438 = vmatprep.mubr.f32.mxu1 %v923_v5  ;;  %v967_v12 = vld [vmem:[%s4688_s3 + $0x258] sm:$0xff] }
 0x159   :  { %2946 = vmatprep.mubr.f32.mxu0 %v906_v13  ;;  %v971_v5 = vld [vmem:[%s4688_s3 + $0x278] sm:$0xff] }
 0x15a   :  { %v999_v13 = vld [vmem:[%s4688_s3 + $0x358] sm:$0xff] }
 0x15b   :  { %1439 = vmatmul.mubr.f32.gmra.mrb[20].mxu1 %v922_v14  ;;  %v1002_v14 = vld [vmem:[%s4688_s3 + $0x370] sm:$0xff] }
 0x15c   :  { %2947 = vmatmul.mubr.f32.gmra.mrb[52].mxu0 %v909_v15  ;;  %1443 = vmatprep.mubr.f32.mxu1 %v926_v16  ;;  %v970_v15 = vld [vmem:[%s4688_s3 + $0x270] sm:$0xff] }
 0x15d   :  { %2949 = vmatprep.mubr.f32.mxu0 %v912_v8  ;;  %v974_v16 = vld [vmem:[%s4688_s3 + $0x290] sm:$0xff]  ;;  %v1005_v8 = vld [vmem:[%s4688_s3 + $0x388] sm:$0xff] }
 0x15f   :  { %1444 = vmatmul.mubr.f32.gmra.mrb[22].mxu1 %v925_v18  ;;  %v1008_v18 = vld [vmem:[%s4688_s3 + $0x3a0] sm:$0xff] }
 0x160   :  { %2950 = vmatmul.mubr.f32.gmra.mrb[54].mxu0 %v915_v19  ;;  %1448 = vmatprep.mubr.f32.mxu1 %v929_v21  ;;  %v973_v19 = vld [vmem:[%s4688_s3 + $0x288] sm:$0xff] }
 0x161   :  { %2952 = vmatprep.mubr.f32.mxu0 %v918_v22  ;;  %v977_v21 = vld [vmem:[%s4688_s3 + $0x2a8] sm:$0xff]  ;;  %v1011_v22 = vld [vmem:[%s4688_s3 + $0x3b8] sm:$0xff] }
 0x163   :  { %1449 = vmatmul.mubr.f32.gmra.mrb[24].mxu1 %v928_v23  ;;  %v1014_v23 = vld [vmem:[%s4688_s3 + $0x3d0] sm:$0xff] }
 0x164   :  { %2953 = vmatmul.mubr.f32.gmra.mrb[56].mxu0 %v921_v17  ;;  %1453 = vmatprep.mubr.f32.mxu1 %v932_v24  ;;  %v976_v17 = vld [vmem:[%s4688_s3 + $0x2a0] sm:$0xff] }
 0x165   :  { %2955 = vmatprep.mubr.f32.mxu0 %v924_v25  ;;  %v980_v24 = vld [vmem:[%s4688_s3 + $0x2c0] sm:$0xff]  ;;  %v1017_v25 = vld [vmem:[%s4688_s3 + $0x3e8] sm:$0xff] }
 0x167   :  { %1454 = vmatmul.mubr.f32.gmra.mrb[26].mxu1 %v931_v26  ;;  %v1020_v26 = vld [vmem:[%s4688_s3 + $0x400] sm:$0xff] }
 0x168   :  { %2956 = vmatmul.mubr.f32.gmra.mrb[58].mxu0 %v927_v20  ;;  %1458 = vmatprep.mubr.f32.mxu1 %v935_v27  ;;  %v979_v20 = vld [vmem:[%s4688_s3 + $0x2b8] sm:$0xff] }
 0x169   :  { %2958 = vmatprep.mubr.f32.mxu0 %v930_v28  ;;  %v983_v27 = vld [vmem:[%s4688_s3 + $0x2d8] sm:$0xff] }
 0x16a   :  { %v1023_v28 = vld [vmem:[%s4688_s3 + $0x418] sm:$0xff] }
 0x16b   :  { %1459 = vmatmul.mubr.f32.gmra.mrb[28].mxu1 %v934_v29  ;;  %v1026_v29 = vld [vmem:[%s4688_s3 + $0x430] sm:$0xff] }
 0x16c   :  { %2959 = vmatmul.mubr.f32.gmra.mrb[60].mxu0 %v933_v30  ;;  %1463 = vmatprep.mubr.f32.mxu1 %v938_v31  ;;  %v982_v30 = vld [vmem:[%s4688_s3 + $0x2d0] sm:$0xff] }
 0x16d   :  { %2961 = vmatprep.mubr.f32.mxu0 %v936_v32  ;;  %v986_v31 = vld [vmem:[%s4688_s3 + $0x2f0] sm:$0xff]  ;;  %v1029_v32 = vld [vmem:[%s4688_s3 + $0x448] sm:$0xff] }
 0x16f   :  { %1464 = vmatmul.mubr.f32.gmra.mrb[30].mxu1 %v937_v34  ;;  %v1032_v34 = vld [vmem:[%s4688_s3 + $0x460] sm:$0xff] }
 0x170   :  { %2962 = vmatmul.mubr.f32.gmra.mrb[62].mxu0 %v939_v35  ;;  %1468 = vmatprep.mubr.f32.mxu1 %v941_v33  ;;  %v985_v35 = vld [vmem:[%s4688_s3 + $0x2e8] sm:$0xff] }
 0x171   :  { %2964 = vmatprep.mubr.f32.mxu0 %v942_v42  ;;  %v989_v33 = vld [vmem:[%s4688_s3 + $0x308] sm:$0xff]  ;;  %v1035_v42 = vld [vmem:[%s4688_s3 + $0x478] sm:$0xff] }
 0x173   :  { %1469 = vmatmul.mubr.f32.gmra.mrb[32].mxu1 %v940_v37  ;;  %v988_v37 = vld [vmem:[%s4688_s3 + $0x300] sm:$0xff] }
 0x174   :  { %2965 = vmatmul.mubr.f32.gmra.mrb[64].mxu0 %v945_v43  ;;  %1473 = vmatprep.mubr.f32.mxu1 %v944_v44  ;;  %v992_v43 = vld [vmem:[%s4688_s3 + $0x320] sm:$0xff]  ;;  %v991_v44 = vld [vmem:[%s4688_s3 + $0x318] sm:$0xff] }
 0x175   :  { %2967 = vmatprep.mubr.f32.mxu0 %v948_v38  ;;  %v995_v38 = vld [vmem:[%s4688_s3 + $0x338] sm:$0xff] }
 0x177   :  { %1474 = vmatmul.mubr.f32.gmra.mrb[34].mxu1 %v943_v46  ;;  %v994_v46 = vld [vmem:[%s4688_s3 + $0x330] sm:$0xff] }
 0x178   :  { %1478 = vmatprep.mubr.f32.mxu1 %v947_v48  ;;  %2968 = vmatmul.mubr.f32.gmra.mrb[66].mxu0 %v951_v49  ;;  %v998_v48 = vld [vmem:[%s4688_s3 + $0x350] sm:$0xff]  ;;  %v997_v49 = vld [vmem:[%s4688_s3 + $0x348] sm:$0xff] }
 0x179   :  { %2970 = vmatprep.mubr.f32.mxu0 %v954_v50  ;;  %v1001_v50 = vld [vmem:[%s4688_s3 + $0x368] sm:$0xff] }
 0x17b   :  { %1479 = vmatmul.mubr.f32.gmra.mrb[36].mxu1 %v946_v51  ;;  %v1000_v51 = vld [vmem:[%s4688_s3 + $0x360] sm:$0xff] }
 0x17c   :  { %1483 = vmatprep.mubr.f32.mxu1 %v950_v39  ;;  %2971 = vmatmul.mubr.f32.gmra.mrb[68].mxu0 %v957_v52  ;;  %v1004_v39 = vld [vmem:[%s4688_s3 + $0x380] sm:$0xff]  ;;  %v1003_v52 = vld [vmem:[%s4688_s3 + $0x378] sm:$0xff] }
 0x17d   :  { %2973 = vmatprep.mubr.f32.mxu0 %v960_v53  ;;  %v1007_v53 = vld [vmem:[%s4688_s3 + $0x398] sm:$0xff] }
 0x17f   :  { %1484 = vmatmul.mubr.f32.gmra.mrb[38].mxu1 %v949_v40  ;;  %v1006_v40 = vld [vmem:[%s4688_s3 + $0x390] sm:$0xff] }
 0x180   :  { %1488 = vmatprep.mubr.f32.mxu1 %v953_v54  ;;  %2974 = vmatmul.mubr.f32.gmra.mrb[70].mxu0 %v963_v55  ;;  %v1010_v54 = vld [vmem:[%s4688_s3 + $0x3b0] sm:$0xff]  ;;  %v1009_v55 = vld [vmem:[%s4688_s3 + $0x3a8] sm:$0xff] }
 0x181   :  { %2976 = vmatprep.mubr.f32.mxu0 %v966_v57  ;;  %v1013_v57 = vld [vmem:[%s4688_s3 + $0x3c8] sm:$0xff] }
 0x183   :  { %1489 = vmatmul.mubr.f32.gmra.mrb[40].mxu1 %v952_v41  ;;  %v1012_v41 = vld [vmem:[%s4688_s3 + $0x3c0] sm:$0xff] }
 0x184   :  { %1493 = vmatprep.mubr.f32.mxu1 %v956_v58  ;;  %2977 = vmatmul.mubr.f32.gmra.mrb[72].mxu0 %v969_v60  ;;  %v1016_v58 = vld [vmem:[%s4688_s3 + $0x3e0] sm:$0xff]  ;;  %v1015_v60 = vld [vmem:[%s4688_s3 + $0x3d8] sm:$0xff] }
 0x185   :  { %2979 = vmatprep.mubr.f32.mxu0 %v972_v61  ;;  %v1019_v61 = vld [vmem:[%s4688_s3 + $0x3f8] sm:$0xff] }
 0x187   :  { %1494 = vmatmul.mubr.f32.gmra.mrb[42].mxu1 %v955_v62  ;;  %v1018_v62 = vld [vmem:[%s4688_s3 + $0x3f0] sm:$0xff] }
 0x188   :  { %1498 = vmatprep.mubr.f32.mxu1 %v959_v45  ;;  %2980 = vmatmul.mubr.f32.gmra.mrb[74].mxu0 %v975_v63  ;;  %v1022_v45 = vld [vmem:[%s4688_s3 + $0x410] sm:$0xff]  ;;  %v1021_v63 = vld [vmem:[%s4688_s3 + $0x408] sm:$0xff] }
 0x189   :  { %2982 = vmatprep.mubr.f32.mxu0 %v978_v0  ;;  %v1025_v0 = vld [vmem:[%s4688_s3 + $0x428] sm:$0xff] }
 0x18b   :  { %1499 = vmatmul.mubr.f32.gmra.mrb[44].mxu1 %v958_v1  ;;  %v1024_v1 = vld [vmem:[%s4688_s3 + $0x420] sm:$0xff] }
 0x18c   :  { %1503 = vmatprep.mubr.f32.mxu1 %v962_v47  ;;  %2983 = vmatmul.mubr.f32.gmra.mrb[76].mxu0 %v981_v2  ;;  %v1028_v47 = vld [vmem:[%s4688_s3 + $0x440] sm:$0xff]  ;;  %v1027_v2 = vld [vmem:[%s4688_s3 + $0x438] sm:$0xff] }
 0x18d   :  { %2985 = vmatprep.mubr.f32.mxu0 %v984_v3  ;;  %v1031_v3 = vld [vmem:[%s4688_s3 + $0x458] sm:$0xff] }
 0x18f   :  { %1504 = vmatmul.mubr.f32.gmra.mrb[46].mxu1 %v961_v56  ;;  %v4456_v56 = vpop.permute.xlu1 %1171 }
 0x190   :  { %1508 = vmatprep.mubr.f32.mxu1 %v965_v4  ;;  %2986 = vmatmul.mubr.f32.gmra.mrb[78].mxu0 %v987_v6  ;;  %v4458_v4 = vpop.permute.xlu0 %1166  ;;  %v1030_v6 = vld [vmem:[%s4688_s3 + $0x450] sm:$0xff] }
 0x191   :  { %2988 = vmatprep.mubr.f32.mxu0 %v990_v7  ;;  %v1034_v7 = vld [vmem:[%s4688_s3 + $0x470] sm:$0xff] }
 0x193   :  { %1509 = vmatmul.mubr.f32.gmra.mrb[48].mxu1 %v964_v9  ;;  %v1092_v9 = vpop.permute.xlu1 %1091 }
 0x194   :  { %1513 = vmatprep.mubr.f32.mxu1 %v968_v10  ;;  %2989 = vmatmul.mubr.f32.gmra.mrb[80].mxu0 %v993_v59  ;;  %v1033_v10 = vld [vmem:[%s4688_s3 + $0x468] sm:$0xff]  ;;  %v1087_v59 = vpop.permute.xlu0 %1086 }
 0x195   :  { %2991 = vmatprep.mubr.f32.mxu0 %v996_v11 }
 0x197   :  { %1514 = vmatmul.mubr.f32.gmra.mrb[50].mxu1 %v967_v12  ;;  %v4469_v11 = vpop.permute.xlu1 %1181 }
 0x198   :  { %1518 = vmatprep.mubr.f32.mxu1 %v971_v5  ;;  %2992 = vmatmul.mubr.f32.gmra.mrb[82].mxu0 %v999_v13  ;;  %v4471_v12 = vpop.permute.xlu0 %1176 }
 0x199   :  { %2994 = vmatprep.mubr.f32.mxu0 %v1002_v14 }
 0x19b   :  { %1519 = vmatmul.mubr.f32.gmra.mrb[52].mxu1 %v970_v15  ;;  %v1102_v5 = vpop.permute.xlu1 %1101 }
 0x19c   :  { %1523 = vmatprep.mubr.f32.mxu1 %v974_v16  ;;  %2995 = vmatmul.mubr.f32.gmra.mrb[84].mxu0 %v1005_v8  ;;  %v1097_v13 = vpop.permute.xlu0 %1096 }
 0x19d   :  { %2997 = vmatprep.mubr.f32.mxu0 %v1008_v18 }
 0x19f   :  { %1524 = vmatmul.mubr.f32.gmra.mrb[54].mxu1 %v973_v19  ;;  %v4473_v14 = vpop.permute.xlu1 %1191 }
 0x1a0   :  { %1528 = vmatprep.mubr.f32.mxu1 %v977_v21  ;;  %2998 = vmatmul.mubr.f32.gmra.mrb[86].mxu0 %v1011_v22  ;;  %v4475_v15 = vpop.permute.xlu0 %1186 }
 0x1a1   :  { %3000 = vmatprep.mubr.f32.mxu0 %v1014_v23 }
 0x1a3   :  { %1529 = vmatmul.mubr.f32.gmra.mrb[56].mxu1 %v976_v17  ;;  %v1112_v16 = vpop.permute.xlu1 %1111 }
 0x1a4   :  { %1533 = vmatprep.mubr.f32.mxu1 %v980_v24  ;;  %3001 = vmatmul.mubr.f32.gmra.mrb[88].mxu0 %v1017_v25  ;;  %v1107_v8 = vpop.permute.xlu0 %1106  ;;  %v1983_v24 = vld [vmem:[%s4690_s5 + $0x8] sm:$0xff] }
 0x1a5   :  { %3003 = vmatprep.mubr.f32.mxu0 %v1020_v26  ;;  %v2151_v25 = vld [vmem:[#allocation2 + $0x8] sm:$0xff] }
 0x1a7   :  { %1534 = vmatmul.mubr.f32.gmra.mrb[58].mxu1 %v979_v20  ;;  %v4477_v21 = vpop.permute.xlu1 %1201 }
 0x1a8   :  { %1538 = vmatprep.mubr.f32.mxu1 %v983_v27  ;;  %3004 = vmatmul.mubr.f32.gmra.mrb[90].mxu0 %v1023_v28  ;;  %v4479_v17 = vpop.permute.xlu0 %1196 }
 0x1a9   :  { %3006 = vmatprep.mubr.f32.mxu0 %v1026_v29 }
 0x1ab   :  { %1539 = vmatmul.mubr.f32.gmra.mrb[60].mxu1 %v982_v30  ;;  %v1122_v27 = vpop.permute.xlu1 %1121 }
 0x1ac   :  { %1543 = vmatprep.mubr.f32.mxu1 %v986_v31  ;;  %3007 = vmatmul.mubr.f32.gmra.mrb[92].mxu0 %v1029_v32  ;;  %v1117_v28 = vpop.permute.xlu0 %1116 }
 0x1ad   :  { %3009 = vmatprep.mubr.f32.mxu0 %v1032_v34 }
 0x1af   :  { %1544 = vmatmul.mubr.f32.gmra.mrb[62].mxu1 %v985_v35  ;;  %v4484_v31 = vpop.permute.xlu1 %1211 }
 0x1b0   :  { %1548 = vmatprep.mubr.f32.mxu1 %v989_v33  ;;  %3010 = vmatmul.mubr.f32.gmra.mrb[94].mxu0 %v1035_v42  ;;  %v4486_v35 = vpop.permute.xlu0 %1206 }
 0x1b1   :  { %2064 = vmatprep.mubr.f32.mxu0 %v1983_v24 }
 0x1b3   :  { %1549 = vmatmul.mubr.f32.gmra.mrb[64].mxu1 %v988_v37  ;;  %v1132_v37 = vpop.permute.xlu1 %1131 }
 0x1b4   :  { %1553 = vmatprep.mubr.f32.mxu1 %v992_v43  ;;  %v1127_v43 = vpop.permute.xlu0 %1126 }
 0x1b7   :  { %1554 = vmatmul.mubr.f32.gmra.mrb[66].mxu1 %v991_v44 }
 0x1b8   :  { %1558 = vmatprep.mubr.f32.mxu1 %v995_v38 }
 0x1bb   :  { %1559 = vmatmul.mubr.f32.gmra.mrb[68].mxu1 %v994_v46  ;;  %v4488_v46 = vpop.permute.xlu1 %1221 }
 0x1bc   :  { %1563 = vmatprep.mubr.f32.mxu1 %v998_v48 }
 0x1bf   :  { %1564 = vmatmul.mubr.f32.gmra.mrb[70].mxu1 %v997_v49 }
 0x1c0   :  { %1568 = vmatprep.mubr.f32.mxu1 %v1001_v50  ;;  %v4490_v50 = vpop.permute.xlu0 %1216 }
 0x1c3   :  { %1569 = vmatmul.mubr.f32.gmra.mrb[72].mxu1 %v1000_v51 }
 0x1c4   :  { %1573 = vmatprep.mubr.f32.mxu1 %v1004_v39 }
 0x1c7   :  { %1574 = vmatmul.mubr.f32.gmra.mrb[74].mxu1 %v1003_v52 }
 0x1c8   :  { %1578 = vmatprep.mubr.f32.mxu1 %v1007_v53 }
 0x1cb   :  { %1579 = vmatmul.mubr.f32.gmra.mrb[76].mxu1 %v1006_v40 }
 0x1cc   :  { %1583 = vmatprep.mubr.f32.mxu1 %v1010_v54  ;;  %v1142_v54 = vpop.permute.xlu1 %1141 }
 0x1cf   :  { %1584 = vmatmul.mubr.f32.gmra.mrb[78].mxu1 %v1009_v55 }
 0x1d0   :  { %1588 = vmatprep.mubr.f32.mxu1 %v1013_v57 }
 0x1d3   :  { %1589 = vmatmul.mubr.f32.gmra.mrb[80].mxu1 %v1012_v41 }
 0x1d4   :  { %1593 = vmatprep.mubr.f32.mxu1 %v1016_v58  ;;  %v1137_v58 = vpop.permute.xlu0 %1136 }
 0x1d7   :  { %1594 = vmatmul.mubr.f32.gmra.mrb[82].mxu1 %v1015_v60 }
 0x1d8   :  { %1598 = vmatprep.mubr.f32.mxu1 %v1019_v61 }
 0x1db   :  { %1599 = vmatmul.mubr.f32.gmra.mrb[84].mxu1 %v1018_v62 }
 0x1dc   :  { %1603 = vmatprep.mubr.f32.mxu1 %v1022_v45 }
 0x1df   :  { %1604 = vmatmul.mubr.f32.gmra.mrb[86].mxu1 %v1021_v63 }
 0x1e0   :  { %1608 = vmatprep.mubr.f32.mxu1 %v1025_v0 }
 0x1e3   :  { %1609 = vmatmul.mubr.f32.gmra.mrb[88].mxu1 %v1024_v1 }
 0x1e4   :  { %1613 = vmatprep.mubr.f32.mxu1 %v1028_v47 }
 0x1e7   :  { %1614 = vmatmul.mubr.f32.gmra.mrb[90].mxu1 %v1027_v2 }
 0x1e8   :  { %1618 = vmatprep.mubr.f32.mxu1 %v1031_v3 }
 0x1eb   :  { %1619 = vmatmul.mubr.f32.gmra.mrb[92].mxu1 %v1030_v6 }
 0x1ec   :  { %1623 = vmatprep.mubr.f32.mxu1 %v1034_v7  ;;  %v4494_v7 = vpop.permute.xlu1 %1231 }
 0x1ef   :  { %1624 = vmatmul.mubr.f32.gmra.mrb[94].mxu1 %v1033_v10 }
 0x1f0   :  { %2232 = vmatprep.mubr.f32.mxu1 %v2151_v25 }
 0x206   :  { %v1390_v18 = vpop.f32.mrb[0].mxu1 }
 0x207   :  { %v1392_v19 = vpop.f32.mrb[1].mxu1  ;;  %v1391_v52 = vadd.f32 %v1390_v18, %v1087_v59 }
 0x20a   :  { %v1395_v22 = vpop.f32.mrb[2].mxu1 }
 0x20b   :  { %v1397_v23 = vpop.f32.mrb[3].mxu1  ;;  %v1396_v51 = vadd.f32 %v1395_v22, %v1092_v9 }
 0x20c   :  { %v4496_v23 = vpop.permute.xlu0 %1226 }
 0x20e   :  { %v1400_v26 = vpop.f32.mrb[4].mxu1 }
 0x20f   :  { %v1402_v20 = vpop.f32.mrb[5].mxu1  ;;  %v1401_v45 = vadd.f32 %v1400_v26, %v1097_v13 }
 0x212   :  { %v1405_v29 = vpop.f32.mrb[6].mxu1 }
 0x213   :  { %v1407_v30 = vpop.f32.mrb[7].mxu1  ;;  %v1406_v60 = vadd.f32 %v1405_v29, %v1102_v5 }
 0x216   :  { %v1410_v32 = vpop.f32.mrb[8].mxu1 }
 0x217   :  { %v1412_v34 = vpop.f32.mrb[9].mxu1  ;;  %v1411_v18 = vadd.f32 %v1410_v32, %v1107_v8 }
 0x21a   :  { %v1415_v33 = vpop.f32.mrb[10].mxu1 }
 0x21b   :  { %v1417_v42 = vpop.f32.mrb[11].mxu1  ;;  %v1416_v9 = vadd.f32 %v1415_v33, %v1112_v16  ;;  %v1152_v33 = vpop.permute.xlu1 %1151 }
 0x21e   :  { %v1420_v44 = vpop.f32.mrb[12].mxu1 }
 0x21f   :  { %v1422_v38 = vpop.f32.mrb[13].mxu1  ;;  %v1421_v34 = vadd.f32 %v1420_v44, %v1117_v28 }
 0x222   :  { %v1425_v48 = vpop.f32.mrb[14].mxu1 }
 0x223   :  { %v1427_v49 = vpop.f32.mrb[15].mxu1  ;;  %v1426_v20 = vadd.f32 %v1425_v48, %v1122_v27 }
 0x226   :  { %v1430_v39 = vpop.f32.mrb[16].mxu1 }
 0x227   :  { %v1432_v53 = vpop.f32.mrb[17].mxu1  ;;  %v2942_v40 = vpop.f32.mrb[48].mxu0 }
 0x228   :  { %v1701_v55 = vadd.f32 %v2942_v40, %v1396_v51  ;;  %v1695_v57 = vpop.f32.mrb[49].mxu0 }
 0x229   :  { %v1696_v41 = vadd.f32 %v1695_v57, %v1391_v52  ;;  %v1147_v52 = vpop.permute.xlu0 %1146  ;;  %v1431_v57 = vadd.f32 %v1430_v39, %v1127_v43 }
 0x22a   :  { %v1935_v61 = vmax.f32 %v1701_v55, 0.0  ;;  %v1435_v62 = vpop.f32.mrb[18].mxu1 }
 0x22b   :  { %v1934_v63 = vmax.f32 %v1696_v41, 0.0  ;;  %v1437_v0 = vpop.f32.mrb[19].mxu1  ;;  %v2945_v1 = vpop.f32.mrb[50].mxu0  ;;  %v1436_v53 = vadd.f32 %v1435_v62, %v1132_v37 }
 0x22c   :  { %v1711_v47 = vadd.f32 %v2945_v1, %v1406_v60  ;;  %v1705_v2 = vpop.f32.mrb[51].mxu0 }
 0x22d   :  { %v4492_v3 = vpack.c.bf16 %v1935_v61, %v1934_v63  ;;  %v1706_v6 = vadd.f32 %v1705_v2, %v1401_v45  ;;  %v4504_v45 = vpop.permute.xlu1 %1241  ;;  %v4506_v62 = vpop.permute.xlu0 %1236 }
 0x22e   :  { %v1937_v10 = vmax.f32 %v1711_v47, 0.0  ;;  %v1440_v59 = vpop.f32.mrb[20].mxu1 }
 0x22f   :  { %v1936_v19 = vmax.f32 %v1706_v6, 0.0  ;;  %v1442_v22 = vpop.f32.mrb[21].mxu1  ;;  %v2948_v5 = vpop.f32.mrb[52].mxu0  ;;  %v1441_v47 = vadd.f32 %v1440_v59, %v1137_v58 }
 0x230   :  { %v1721_v13 = vadd.f32 %v2948_v5, %v1416_v9  ;;  %v1715_v24 = vpop.f32.mrb[53].mxu0 }
 0x231   :  { %v4498_v25 = vpack.c.bf16 %v1937_v10, %v1936_v19  ;;  %v1716_v26 = vadd.f32 %v1715_v24, %v1411_v18  ;;  %v1162_v58 = vpop.permute.xlu1 %1161 }
 0x232   :  { %v1939_v29 = vmax.f32 %v1721_v13, 0.0  ;;  %v1445_v30 = vpop.f32.mrb[22].mxu1 }
 0x233   :  { %v1938_v42 = vmax.f32 %v1716_v26, 0.0  ;;  %v1447_v38 = vpop.f32.mrb[23].mxu1  ;;  %v2951_v16 = vpop.f32.mrb[54].mxu0  ;;  %v1446_v63 = vadd.f32 %v1445_v30, %v1142_v54 }
 0x234   :  { %v1731_v49 = vadd.f32 %v2951_v16, %v1426_v20  ;;  %v1725_v8 = vpop.f32.mrb[55].mxu0  ;;  %v1157_v30 = vpop.permute.xlu0 %1156 }
 0x235   :  { %v4500_v32 = vpack.c.bf16 %v1939_v29, %v1938_v42  ;;  %v1726_v51 = vadd.f32 %v1725_v8, %v1421_v34 }
 0x236   :  { %v1941_v40 = vmax.f32 %v1731_v49, 0.0  ;;  %v1450_v55 = vpop.f32.mrb[24].mxu1 }
 0x237   :  { %v1940_v41 = vmax.f32 %v1726_v51, 0.0  ;;  %v1452_v60 = vpop.f32.mrb[25].mxu1  ;;  %v2954_v27 = vpop.f32.mrb[56].mxu0  ;;  %v1451_v5 = vadd.f32 %v1450_v55, %v1147_v52 }
 0x238   :  { %v1741_v48 = vadd.f32 %v2954_v27, %v1436_v53  ;;  %v1735_v61 = vpop.f32.mrb[57].mxu0 }
 0x239   :  { %v4502_v28 = vpack.c.bf16 %v1941_v40, %v1940_v41  ;;  %v1736_v44 = vadd.f32 %v1735_v61, %v1431_v57 }
 0x23a   :  { %v1943_v0 = vmax.f32 %v1741_v48, 0.0  ;;  %v1455_v1 = vpop.f32.mrb[26].mxu1 }
 0x23b   :  { %v1942_v2 = vmax.f32 %v1736_v44, 0.0  ;;  %v1457_v6 = vpop.f32.mrb[27].mxu1  ;;  %v2957_v37 = vpop.f32.mrb[58].mxu0  ;;  %v1456_v18 = vadd.f32 %v1455_v1, %v1152_v33 }
 0x23c   :  { %v1751_v43 = vadd.f32 %v2957_v37, %v1446_v63  ;;  %v1745_v39 = vpop.f32.mrb[59].mxu0 }
 0x23d   :  { %v4508_v9 = vpack.c.bf16 %v1943_v0, %v1942_v2  ;;  %v1746_v10 = vadd.f32 %v1745_v39, %v1441_v47 }
 0x23e   :  { %v1945_v19 = vmax.f32 %v1751_v43, 0.0  ;;  %v1460_v22 = vpop.f32.mrb[28].mxu1 }
 0x23f   :  { %v1944_v13 = vmax.f32 %v1746_v10, 0.0  ;;  %v1462_v24 = vpop.f32.mrb[29].mxu1  ;;  %v2960_v54 = vpop.f32.mrb[60].mxu0  ;;  %v1461_v38 = vadd.f32 %v1460_v22, %v1157_v30 }
 0x240   :  { %v1761_v26 = vadd.f32 %v2960_v54, %v1456_v18  ;;  %v1755_v20 = vpop.f32.mrb[61].mxu0 }
 0x241   :  { %v4510_v59 = vpack.c.bf16 %v1945_v19, %v1944_v13  ;;  %v1756_v29 = vadd.f32 %v1755_v20, %v1451_v5 }
 0x242   :  { %v1947_v34 = vmax.f32 %v1761_v26, 0.0  ;;  %v1465_v42 = vpop.f32.mrb[30].mxu1 }
 0x243   :  { %v1946_v16 = vmax.f32 %v1756_v29, 0.0  ;;  %v1466_v49 = vadd.f32 %v1465_v42, %v1162_v58  ;;  %v1467_v8 = vpop.f32.mrb[31].mxu1  ;;  %v2963_v33 = vpop.f32.mrb[62].mxu0 }
 0x244   :  { %v1765_v51 = vpop.f32.mrb[63].mxu0 }
 0x245   :  { %v4512_v53 = vpack.c.bf16 %v1947_v34, %v1946_v16  ;;  %v1771_v52 = vadd.f32 %v2963_v33, %v1466_v49  ;;  %v1766_v40 = vadd.f32 %v1765_v51, %v1461_v38 }
 0x246   :  { %v1470_v55 = vpop.f32.mrb[32].mxu1 }
 0x247   :  { %v1949_v57 = vmax.f32 %v1771_v52, 0.0  ;;  %v1948_v41 = vmax.f32 %v1766_v40, 0.0  ;;  %v1471_v60 = vadd.f32 %v1470_v55, %v4458_v4  ;;  %v1472_v27 = vpop.f32.mrb[33].mxu1  ;;  %v2966_v48 = vpop.f32.mrb[64].mxu0 }
 0x248   :  { %v1775_v61 = vpop.f32.mrb[65].mxu0 }
 0x249   :  { %v4515_v44 = vpack.c.bf16 %v1949_v57, %v1948_v41  ;;  %v1776_v63 = vadd.f32 %v1775_v61, %v1471_v60 }
 0x24a   :  { %v1475_v0 = vpop.f32.mrb[34].mxu1 }
 0x24b   :  { %v1476_v1 = vadd.f32 %v1475_v0, %v4456_v56  ;;  %v1477_v47 = vpop.f32.mrb[35].mxu1  ;;  %v2969_v2 = vpop.f32.mrb[66].mxu0  ;;  %v1950_v39 = vmax.f32 %v1776_v63, 0.0 }
 0x24c   :  { %v1785_v6 = vpop.f32.mrb[67].mxu0 }
 0x24d   :  { %v1781_v37 = vadd.f32 %v2966_v48, %v1476_v1 }
 0x24e   :  { %v1480_v43 = vpop.f32.mrb[36].mxu1 }
 0x24f   :  { %v1951_v10 = vmax.f32 %v1781_v37, 0.0  ;;  %v1481_v18 = vadd.f32 %v1480_v43, %v4471_v12  ;;  %v1482_v19 = vpop.f32.mrb[37].mxu1  ;;  %v2972_v4 = vpop.f32.mrb[68].mxu0 }
 0x250   :  { %v1795_v22 = vpop.f32.mrb[69].mxu0 }
 0x251   :  { %v1786_v5 = vadd.f32 %v1785_v6, %v1481_v18  ;;  %v3176_v13 = vpack.c.bf16 %v1951_v10, %v1950_v39 }
 0x252   :  { %v1485_v24 = vpop.f32.mrb[38].mxu1 }
 0x253   :  { %v1486_v54 = vadd.f32 %v1485_v24, %v4469_v11  ;;  %3177 = vmatprep.subr.bf16.mxu0 %v3176_v13  ;;  %3241 = vmatprep.subr.bf16.mxu1 %v3176_v13  ;;  %v1487_v56 = vpop.f32.mrb[39].mxu1  ;;  %v2975_v26 = vpop.f32.mrb[70].mxu0  ;;  %v1952_v12 = vmax.f32 %v1786_v5, 0.0 }
 0x254   :  { %3179 = vmatpush3.bf16.msra.mxu0 %v4492_v3  ;;  %3243 = vmatpush3.bf16.msra.mxu1 %v4492_v3  ;;  %v1805_v20 = vpop.f32.mrb[71].mxu0 }
 0x255   :  { %v1791_v58 = vadd.f32 %v2969_v2, %v1486_v54 }
 0x256   :  { %v1490_v29 = vpop.f32.mrb[40].mxu1 }
 0x257   :  { %v1953_v30 = vmax.f32 %v1791_v58, 0.0  ;;  %v1491_v34 = vadd.f32 %v1490_v29, %v4475_v15  ;;  %v1492_v42 = vpop.f32.mrb[41].mxu1  ;;  %v2978_v38 = vpop.f32.mrb[72].mxu0 }
 0x258   :  { %v1815_v16 = vpop.f32.mrb[73].mxu0 }
 0x259   :  { %v1796_v49 = vadd.f32 %v1795_v22, %v1491_v34  ;;  %v3180_v11 = vpack.c.bf16 %v1953_v30, %v1952_v12 }
 0x25a   :  { %v1495_v8 = vpop.f32.mrb[42].mxu1 }
 0x25b   :  { %v1496_v33 = vadd.f32 %v1495_v8, %v4473_v14  ;;  %3181 = vmatprep.subr.bf16.mxu0 %v3180_v11  ;;  %3245 = vmatprep.subr.bf16.mxu1 %v3180_v11  ;;  %v1497_v51 = vpop.f32.mrb[43].mxu1  ;;  %v2981_v52 = vpop.f32.mrb[74].mxu0  ;;  %v1954_v15 = vmax.f32 %v1796_v49, 0.0 }
 0x25c   :  { %3183 = vmatpush3.bf16.msra.mxu0 %v4498_v25  ;;  %3247 = vmatpush3.bf16.msra.mxu1 %v4498_v25  ;;  %v1825_v3 = vpop.f32.mrb[75].mxu0 }
 0x25d   :  { %v1801_v40 = vadd.f32 %v2972_v4, %v1496_v33 }
 0x25e   :  { %v1500_v55 = vpop.f32.mrb[44].mxu1 }
 0x25f   :  { %v1955_v57 = vmax.f32 %v1801_v40, 0.0  ;;  %v1501_v41 = vadd.f32 %v1500_v55, %v4479_v17  ;;  %v1502_v60 = vpop.f32.mrb[45].mxu1  ;;  %v4527_v27 = vpop.f32.mrb[76].mxu0 }
 0x260   :  { %v1835_v48 = vpop.f32.mrb[77].mxu0 }
 0x261   :  { %v1806_v14 = vadd.f32 %v1805_v20, %v1501_v41  ;;  %v3184_v61 = vpack.c.bf16 %v1955_v57, %v1954_v15 }
 0x262   :  { %v1505_v63 = vpop.f32.mrb[46].mxu1 }
 0x263   :  { %v1506_v0 = vadd.f32 %v1505_v63, %v4477_v21  ;;  %3185 = vmatprep.subr.bf16.mxu0 %v3184_v61  ;;  %3249 = vmatprep.subr.bf16.mxu1 %v3184_v61  ;;  %v1507_v1 = vpop.f32.mrb[47].mxu1  ;;  %v4530_v25 = vpop.f32.mrb[78].mxu0  ;;  %v1956_v6 = vmax.f32 %v1806_v14, 0.0 }
 0x264   :  { %3187 = vmatpush3.bf16.msra.mxu0 %v4500_v32  ;;  %3251 = vmatpush3.bf16.msra.mxu1 %v4500_v32  ;;  %v4534_v47 = vpop.f32.mrb[79].mxu0 }
 0x265   :  { %v1811_v17 = vadd.f32 %v2975_v26, %v1506_v0 }
 0x266   :  { %v1510_v2 = vpop.f32.mrb[48].mxu1 }
 0x267   :  { %v1957_v37 = vmax.f32 %v1811_v17, 0.0  ;;  %v1511_v43 = vadd.f32 %v1510_v2, %v4486_v35  ;;  %v1512_v39 = vpop.f32.mrb[49].mxu1  ;;  %v4537_v10 = vpop.f32.mrb[80].mxu0 }
 0x268   :  { %v4539_v21 = vpop.f32.mrb[81].mxu0 }
 0x269   :  { %v1816_v18 = vadd.f32 %v1815_v16, %v1511_v43  ;;  %v3188_v19 = vpack.c.bf16 %v1957_v37, %v1956_v6  ;;  %v1247_v37 = vpop.permute.xlu0 %1246 }
 0x26a   :  { %v1515_v4 = vpop.f32.mrb[50].mxu1 }
 0x26b   :  { %v1516_v22 = vadd.f32 %v1515_v4, %v4484_v31  ;;  %3189 = vmatprep.subr.bf16.mxu0 %v3188_v19  ;;  %3253 = vmatprep.subr.bf16.mxu1 %v3188_v19  ;;  %v1517_v32 = vpop.f32.mrb[51].mxu1  ;;  %v4542_v5 = vpop.f32.mrb[82].mxu0  ;;  %v1958_v54 = vmax.f32 %v1816_v18, 0.0 }
 0x26c   :  { %3191 = vmatpush3.bf16.msra.mxu0 %v4502_v28  ;;  %3255 = vmatpush3.bf16.msra.mxu1 %v4502_v28  ;;  %v4546_v35 = vpop.f32.mrb[83].mxu0 }
 0x26d   :  { %v1821_v13 = vadd.f32 %v2978_v38, %v1516_v22  ;;  %v1252_v22 = vpop.permute.xlu1 %1251 }
 0x26e   :  { %v1520_v24 = vpop.f32.mrb[52].mxu1 }
 0x26f   :  { %v1959_v56 = vmax.f32 %v1821_v13, 0.0  ;;  %v1521_v26 = vadd.f32 %v1520_v24, %v4490_v50  ;;  %v1522_v20 = vpop.f32.mrb[53].mxu1  ;;  %v4549_v58 = vpop.f32.mrb[84].mxu0 }
 0x270   :  { %v4551_v31 = vpop.f32.mrb[85].mxu0 }
 0x271   :  { %v1826_v29 = vadd.f32 %v1825_v3, %v1521_v26  ;;  %v3192_v12 = vpack.c.bf16 %v1959_v56, %v1958_v54  ;;  %v2154_v56 = vld [vmem:[#allocation2 + $0x20] sm:$0x3]  ;;  %v1257_v26 = vpop.permute.xlu0 %1256 }
 0x272   :  { %v1525_v30 = vpop.f32.mrb[54].mxu1 }
 0x273   :  { %v1526_v34 = vadd.f32 %v1525_v30, %v4488_v46  ;;  %3193 = vmatprep.subr.bf16.mxu0 %v3192_v12  ;;  %3257 = vmatprep.subr.bf16.mxu1 %v3192_v12  ;;  %v1527_v28 = vpop.f32.mrb[55].mxu1  ;;  %v4554_v42 = vpop.f32.mrb[86].mxu0  ;;  %v1960_v49 = vmax.f32 %v1826_v29, 0.0 }
 0x274   :  { %3195 = vmatpush3.bf16.msra.mxu0 %v4508_v9  ;;  %3259 = vmatpush3.bf16.msra.mxu1 %v4508_v9  ;;  %v4558_v50 = vpop.f32.mrb[87].mxu0 }
 0x275   :  { %v1831_v38 = vadd.f32 %v2981_v52, %v1526_v34 }
 0x276   :  { %v1530_v16 = vpop.f32.mrb[56].mxu1 }
 0x277   :  { %v1961_v11 = vmax.f32 %v1831_v38, 0.0  ;;  %v1531_v8 = vadd.f32 %v1530_v16, %v4496_v23  ;;  %v1532_v33 = vpop.f32.mrb[57].mxu1  ;;  %v4561_v51 = vpop.f32.mrb[88].mxu0  ;;  %v2153_v38 = vld [vmem:[#allocation2 + $0x18] sm:$0x3] }
 0x278   :  { %v4563_v46 = vpop.f32.mrb[89].mxu0  ;;  %v1262_v16 = vpop.permute.xlu1 %1261 }
 0x279   :  { %v1836_v3 = vadd.f32 %v1835_v48, %v1531_v8  ;;  %v3196_v40 = vpack.c.bf16 %v1961_v11, %v1960_v49  ;;  %v1984_v11 = vld [vmem:[%s4690_s5 + $0x10] sm:$0xff] }
 0x27a   :  { %v1535_v55 = vpop.f32.mrb[58].mxu1 }
 0x27b   :  { %v1536_v15 = vadd.f32 %v1535_v55, %v4494_v7  ;;  %3197 = vmatprep.subr.bf16.mxu0 %v3196_v40  ;;  %3261 = vmatprep.subr.bf16.mxu1 %v3196_v40  ;;  %v1537_v9 = vpop.f32.mrb[59].mxu1  ;;  %v4566_v57 = vpop.f32.mrb[90].mxu0  ;;  %v1962_v60 = vmax.f32 %v1836_v3, 0.0 }
 0x27c   :  { %3199 = vmatpush3.bf16.msra.mxu0 %v4510_v59  ;;  %3263 = vmatpush3.bf16.msra.mxu1 %v4510_v59  ;;  %v4570_v23 = vpop.f32.mrb[91].mxu0  ;;  %v1267_v40 = vpop.permute.xlu0 %1266 }
 0x27d   :  { %v1841_v52 = vadd.f32 %v4527_v27, %v1536_v15 }
 0x27e   :  { %v1540_v41 = vpop.f32.mrb[60].mxu1 }
 0x27f   :  { %v1963_v48 = vmax.f32 %v1841_v52, 0.0  ;;  %v1541_v14 = vadd.f32 %v1540_v41, %v4506_v62  ;;  %v1542_v61 = vpop.f32.mrb[61].mxu1  ;;  %v4574_v7 = vpop.f32.mrb[92].mxu0 }
 0x280   :  { %v4576_v63 = vpop.f32.mrb[93].mxu0 }
 0x281   :  { %v1846_v0 = vadd.f32 %v4534_v47, %v1541_v14  ;;  %v3200_v1 = vpack.c.bf16 %v1963_v48, %v1962_v60  ;;  %v1272_v48 = vpop.permute.xlu1 %1271 }
 0x282   :  { %v1545_v17 = vpop.f32.mrb[62].mxu1 }
 0x283   :  { %v1546_v59 = vadd.f32 %v1545_v17, %v4504_v45  ;;  %3201 = vmatprep.subr.bf16.mxu0 %v3200_v1  ;;  %3265 = vmatprep.subr.bf16.mxu1 %v3200_v1  ;;  %v1547_v2 = vpop.f32.mrb[63].mxu1  ;;  %v4580_v27 = vpop.f32.mrb[94].mxu0  ;;  %v1964_v47 = vmax.f32 %v1846_v0, 0.0 }
 0x284   :  { %3203 = vmatpush3.bf16.msra.mxu0 %v4512_v53  ;;  %3267 = vmatpush3.bf16.msra.mxu1 %v4512_v53  ;;  %v4584_v62 = vpop.f32.mrb[95].mxu0  ;;  %v1982_v53 = vld [vmem:[%s4690_s5] sm:$0xff]  ;;  %v1277_v1 = vpop.permute.xlu0 %1276 }
 0x285   :  { %v1851_v6 = vadd.f32 %v4530_v25, %v1546_v59  ;;  %v2150_v25 = vld [vmem:[#allocation2] sm:$0xff] }
 0x286   :  { %v1550_v43 = vpop.f32.mrb[64].mxu1 }
 0x287   :  { %v1965_v39 = vmax.f32 %v1851_v6, 0.0  ;;  %v1551_v18 = vadd.f32 %v1550_v43, %v1247_v37  ;;  %v1552_v19 = vpop.f32.mrb[65].mxu1 }
 0x289   :  { %v1856_v45 = vadd.f32 %v4539_v21, %v1551_v18  ;;  %v3204_v4 = vpack.c.bf16 %v1965_v39, %v1964_v47  ;;  %v1986_v21 = vld [vmem:[%s4690_s5 + $0x20] sm:$0x3]  ;;  %v1282_v47 = vpop.permute.xlu1 %1281 }
 0x28a   :  { %v1555_v32 = vpop.f32.mrb[66].mxu1 }
 0x28b   :  { %v1556_v13 = vadd.f32 %v1555_v32, %v1252_v22  ;;  %3205 = vmatprep.subr.bf16.mxu0 %v3204_v4  ;;  %3269 = vmatprep.subr.bf16.mxu1 %v3204_v4  ;;  %v1557_v24 = vpop.f32.mrb[67].mxu1  ;;  %v1966_v29 = vmax.f32 %v1856_v45, 0.0  ;;  %v1287_v45 = vpop.permute.xlu0 %1286 }
 0x28c   :  { %3207 = vmatpush3.bf16.msra.mxu0 %v4515_v44  ;;  %3271 = vmatpush3.bf16.msra.mxu1 %v4515_v44 }
 0x28d   :  { %v1861_v54 = vadd.f32 %v4537_v10, %v1556_v13  ;;  %3308 = vmatprep.subr.bf16.mxu1 %v3408_v36  ;;  %v1985_v10 = vld [vmem:[%s4690_s5 + $0x18] sm:$0x3] }
 0x28e   :  { %v1560_v20 = vpop.f32.mrb[68].mxu1 }
 0x28f   :  { %v1967_v12 = vmax.f32 %v1861_v54, 0.0  ;;  %v1561_v30 = vadd.f32 %v1560_v20, %v1257_v26  ;;  %2065 = vmatmul.mubr.f32.vlgmr.msra.gmra.mrb[96].mxu0 %v1982_v53  ;;  %2233 = vmatmul.mubr.f32.vlgmr.msra.gmra.mrb[96].mxu1 %v2150_v25  ;;  %v1562_v44 = vpop.f32.mrb[69].mxu1  ;;  %v1292_v25 = vpop.permute.xlu1 %1291 }
 0x290   :  { %2069 = vmatprep.mubr.f32.mxu0 %v1986_v21  ;;  %2237 = vmatprep.mubr.f32.mxu1 %v2154_v56  ;;  %v1297_v26 = vpop.permute.xlu0 %1296 }
 0x291   :  { %v4601_v34 = vpack.c.bf16 %v1967_v12, %v1966_v29  ;;  %v1866_v28 = vadd.f32 %v4546_v35, %v1561_v30 }
 0x292   :  { %v1565_v49 = vpop.f32.mrb[70].mxu1 }
 0x293   :  { %v1566_v8 = vadd.f32 %v1565_v49, %v1262_v16  ;;  %2070 = vmatmul.mubr.f32.gmra.mrb[98].mxu0 %v1985_v10  ;;  %3209 = vmatprep.subr.bf16.mxu0 %v4601_v34  ;;  %v1567_v33 = vpop.f32.mrb[71].mxu1  ;;  %v1968_v55 = vmax.f32 %v1866_v28, 0.0 }
 0x294   :  { %2238 = vmatmul.mubr.f32.gmra.mrb[98].mxu1 %v2153_v38  ;;  %3211 = vmatpush3.bf16.msra.mxu0 %v4601_v34 }
 0x295   :  { %v1871_v3 = vadd.f32 %v4542_v5, %v1566_v8  ;;  %3044 = vmatprep.mubr.f32.mxu0 %v1984_v11  ;;  %v1307_v8 = vpop.permute.xlu0 %1306 }
 0x296   :  { %v1570_v35 = vpop.f32.mrb[72].mxu1 }
 0x297   :  { %v1969_v15 = vmax.f32 %v1871_v3, 0.0  ;;  %v1571_v9 = vadd.f32 %v1570_v35, %v1267_v40  ;;  %v1572_v52 = vpop.f32.mrb[73].mxu1 }
 0x299   :  { %v4610_v41 = vpack.c.bf16 %v1969_v15, %v1968_v55  ;;  %v1876_v60 = vadd.f32 %v4551_v31, %v1571_v9 }
 0x29a   :  { %v1575_v14 = vpop.f32.mrb[74].mxu1 }
 0x29b   :  { %v1576_v61 = vadd.f32 %v1575_v14, %v1272_v48  ;;  %3213 = vmatprep.subr.bf16.mxu0 %v4610_v41  ;;  %v1577_v0 = vpop.f32.mrb[75].mxu1  ;;  %v1970_v59 = vmax.f32 %v1876_v60, 0.0  ;;  %v1317_v14 = vpop.permute.xlu0 %1316 }
 0x29c   :  { %3215 = vmatpush3.bf16.msra.mxu0 %v4610_v41 }
 0x29d   :  { %v1881_v5 = vadd.f32 %v4549_v58, %v1576_v61 }
 0x29e   :  { %v1580_v17 = vpop.f32.mrb[76].mxu1 }
 0x29f   :  { %v1971_v2 = vmax.f32 %v1881_v5, 0.0  ;;  %v1581_v6 = vadd.f32 %v1580_v17, %v1277_v1  ;;  %v1582_v37 = vpop.f32.mrb[77].mxu1 }
 0x2a1   :  { %v4616_v43 = vpack.c.bf16 %v1971_v2, %v1970_v59  ;;  %v1886_v31 = vadd.f32 %v4558_v50, %v1581_v6 }
 0x2a2   :  { %v1585_v39 = vpop.f32.mrb[78].mxu1 }
 0x2a3   :  { %v1586_v18 = vadd.f32 %v1585_v39, %v1282_v47  ;;  %3217 = vmatprep.subr.bf16.mxu0 %v4616_v43  ;;  %v1587_v19 = vpop.f32.mrb[79].mxu1  ;;  %v1972_v22 = vmax.f32 %v1886_v31, 0.0 }
 0x2a4   :  { %3219 = vmatpush3.bf16.msra.mxu0 %v4616_v43 }
 0x2a5   :  { %v1891_v58 = vadd.f32 %v4554_v42, %v1586_v18  ;;  %v1987_v18 = vld [vmem:[%s4690_s5 + $0x28] sm:$0x3] }
 0x2a6   :  { %v1590_v4 = vpop.f32.mrb[80].mxu1 }
 0x2a7   :  { %v1973_v32 = vmax.f32 %v1891_v58, 0.0  ;;  %v1591_v13 = vadd.f32 %v1590_v4, %v1287_v45  ;;  %v1592_v24 = vpop.f32.mrb[81].mxu1 }
 0x2a9   :  { %v4622_v53 = vpack.c.bf16 %v1973_v32, %v1972_v22  ;;  %v1896_v50 = vadd.f32 %v4563_v46, %v1591_v13  ;;  %v1302_v46 = vpop.permute.xlu1 %1301 }
 0x2aa   :  { %v1595_v54 = vpop.f32.mrb[82].mxu1 }
 0x2ab   :  { %v1596_v21 = vadd.f32 %v1595_v54, %v1292_v25  ;;  %3221 = vmatprep.subr.bf16.mxu0 %v4622_v53  ;;  %v1597_v56 = vpop.f32.mrb[83].mxu1  ;;  %v1974_v29 = vmax.f32 %v1896_v50, 0.0  ;;  %v3410_v50 = vmov 0.0   ;;  %v2161_v54 = vpop.permute.xlu0 %2160 }
 0x2ac   :  { %3223 = vmatpush3.bf16.msra.mxu0 %v4622_v53  ;;  %3093 = vmatprep.mubr.msk.f32.mxu1 %vm3409_vm2, %v3410_v50 }
 0x2ad   :  { %v1901_v42 = vadd.f32 %v4561_v51, %v1596_v21  ;;  %v1312_v9 = vpop.permute.xlu1 %1311 }
 0x2ae   :  { %v1600_v20 = vpop.f32.mrb[84].mxu1 }
 0x2af   :  { %v1975_v12 = vmax.f32 %v1901_v42, 0.0  ;;  %v1601_v30 = vadd.f32 %v1600_v20, %v1297_v26  ;;  %v1602_v44 = vpop.f32.mrb[85].mxu1  ;;  %v1993_v21 = vpop.permute.xlu0 %1992 }
 0x2b1   :  { %v3224_v10 = vpack.c.bf16 %v1975_v12, %v1974_v29  ;;  %v1906_v28 = vadd.f32 %v4570_v23, %v1601_v30  ;;  %v1322_v2 = vpop.permute.xlu1 %1321 }
 0x2b2   :  { %v1605_v38 = vpop.f32.mrb[86].mxu1 }
 0x2b3   :  { %v1606_v16 = vadd.f32 %v1605_v38, %v1302_v46  ;;  %3225 = vmatprep.subr.bf16.mxu0 %v3224_v10  ;;  %v1607_v49 = vpop.f32.mrb[87].mxu1  ;;  %v1976_v51 = vmax.f32 %v1906_v28, 0.0 }
 0x2b4   :  { %3227 = vmatpush3.bf16.msra.mxu0 %v3224_v10 }
 0x2b5   :  { %v1911_v11 = vadd.f32 %v4566_v57, %v1606_v16  ;;  %v2166_v25 = vpop.permute.xlu1 %2165 }
 0x2b6   :  { %v1610_v33 = vpop.f32.mrb[88].mxu1 }
 0x2b7   :  { %v1977_v3 = vmax.f32 %v1911_v11, 0.0  ;;  %v1611_v40 = vadd.f32 %v1610_v33, %v1307_v8  ;;  %v1612_v35 = vpop.f32.mrb[89].mxu1 }
 0x2b9   :  { %v3228_v55 = vpack.c.bf16 %v1977_v3, %v1976_v51  ;;  %v1916_v15 = vadd.f32 %v4576_v63, %v1611_v40 }
 0x2ba   :  { %v1615_v52 = vpop.f32.mrb[90].mxu1 }
 0x2bb   :  { %v1616_v23 = vadd.f32 %v1615_v52, %v1312_v9  ;;  %3229 = vmatprep.subr.bf16.mxu0 %v3228_v55  ;;  %v1617_v60 = vpop.f32.mrb[91].mxu1  ;;  %v1978_v57 = vmax.f32 %v1916_v15, 0.0 }
 0x2bc   :  { %3231 = vmatpush3.bf16.msra.mxu0 %v3228_v55 }
 0x2bd   :  { %v1921_v48 = vadd.f32 %v4574_v7, %v1616_v23 }
 0x2be   :  { %v1620_v61 = vpop.f32.mrb[92].mxu1 }
 0x2bf   :  { %v1979_v0 = vmax.f32 %v1921_v48, 0.0  ;;  %v1621_v5 = vadd.f32 %v1620_v61, %v1317_v14  ;;  %v1622_v1 = vpop.f32.mrb[93].mxu1 }
 0x2c1   :  { %v3232_v17 = vpack.c.bf16 %v1979_v0, %v1978_v57  ;;  %v1926_v59 = vadd.f32 %v4584_v62, %v1621_v5  ;;  %v2152_v62 = vld [vmem:[#allocation2 + $0x10] sm:$0xff] }
 0x2c2   :  { %v1625_v6 = vpop.f32.mrb[94].mxu1 }
 0x2c3   :  { %v1626_v63 = vadd.f32 %v1625_v6, %v1322_v2  ;;  %3233 = vmatprep.subr.bf16.mxu0 %v3232_v17  ;;  %v1627_v37 = vpop.f32.mrb[95].mxu1  ;;  %v1980_v47 = vmax.f32 %v1926_v59, 0.0 }
 0x2c4   :  { %3235 = vmatpush3.bf16.msra.mxu0 %v3232_v17 }
 0x2c5   :  { %v1931_v31 = vadd.f32 %v4580_v27, %v1626_v63  ;;  %v2155_v27 = vld [vmem:[#allocation2 + $0x28] sm:$0x3] }
 0x2c7   :  { %v1981_v39 = vmax.f32 %v1931_v31, 0.0 }
 0x2c9   :  { %v3236_v7 = vpack.c.bf16 %v1981_v39, %v1980_v47 }
 0x2cb   :  { %3237 = vmatprep.subr.bf16.mxu0 %v3236_v7 }
 0x2cc   :  { %3239 = vmatpush3.bf16.msra.mxu0 %v3236_v7 }
 0x2cd   :  { %3273 = vmatprep.subr.bf16.mxu0 %v4601_v34 }
 0x2cf   :  { %3045 = vmatmul.mubr.f32.vlgmr.msra.gmra.mrb[100].mxu0 %v1987_v18 }
 0x2d0   :  { %3275 = vmatpush3.bf16.msra.mxu0 %v4601_v34  ;;  %3079 = vmatprep.mubr.f32.mxu0 %v2152_v62 }
 0x2d1   :  { %3277 = vmatprep.subr.bf16.mxu0 %v4610_v41 }
 0x2d4   :  { %3279 = vmatpush3.bf16.msra.mxu0 %v4610_v41 }
 0x2d5   :  { %3281 = vmatprep.subr.bf16.mxu0 %v4616_v43 }
 0x2d8   :  { %3283 = vmatpush3.bf16.msra.mxu0 %v4616_v43 }
 0x2d9   :  { %3285 = vmatprep.subr.bf16.mxu0 %v4622_v53 }
 0x2dc   :  { %3287 = vmatpush3.bf16.msra.mxu0 %v4622_v53 }
 0x2dd   :  { %3289 = vmatprep.subr.bf16.mxu0 %v3224_v10 }
 0x2e0   :  { %3291 = vmatpush3.bf16.msra.mxu0 %v3224_v10  ;;  %v2356_v10 = vld [vmem:[%s4694_s9] sm:$0x3]  ;;  %s3412_s9 = smov [#allocation5]  }
 0x2e1   :  { %3293 = vmatprep.subr.bf16.mxu0 %v3228_v55  ;;  %s2527_s17 = sshll.u32 %s3412_s9, 4  ;;  %s2528_s17 = int_to_ptr.vmem [resolvable:$true] %s2527_s17 }
 0x2e2   :  { %s3354_s7 = scalar_lea.vmem %s2528_s17, 32  ;;  %p3359_p9 = scmp.lt.s32.totalorder %s2528_s17, %s2528_s17 }
 0x2e3   :  { %p3355_p8 = scmp.ne.s32.totalorder %s2528_s17, %s3354_s7  ;;  %p3360_p10 = scmp.lt.s32.totalorder %s3354_s7, %s3354_s7 }
 0x2e4   :  { %3295 = vmatpush3.bf16.msra.mxu0 %v3228_v55 }
 0x2e5   :  { %3297 = vmatprep.subr.bf16.mxu0 %v3232_v17  ;;  %p3361_p11 = por %p3360_p10, %p3359_p9 }
 0x2e7   :  { %p3362_p12 = pnand %p3361_p11, %p3355_p8 }
 0x2e8   :  { %3299 = vmatpush3.bf16.msra.mxu0 %v3232_v17 }
 0x2e9   :  { %3301 = vmatprep.subr.bf16.mxu0 %v3236_v7 }
 0x2ec   :  { %3303 = vmatpush3.bf16.msra.mxu0 %v3236_v7 }
 0x2ed   :  { %3304 = vmatprep.subr.bf16.mxu0 %v3408_v36  ;;  %v1998_v36 = vpop.permute.xlu1 %1997 }
 0x2ef   :  { %3080 = vmatmul.mubr.f32.vlgmr.msra.gmra.mrb[102].mxu0 %v2155_v27 }
 0x2f0   :  { %3086 = vmatprep.mubr.msk.f32.mxu0 %vm3409_vm2, %v3410_v50 }
 0x362   :  { %v2748_v34 = vpop.f32.mrb[96].mxu0  ;;  %v2804_v41 = vpop.f32.mrb[96].mxu1 }
 0x363   :  { %v2749_v19 = vpop.f32.mrb[97].mxu0  ;;  %v2805_v43 = vpop.f32.mrb[97].mxu1 }
 0x364   :  { %v2750_v58 = vadd.f32 %v2749_v19, %v2748_v34  ;;  %v2806_v45 = vadd.f32 %v2805_v43, %v2804_v41 }
 0x366   :  { %v2751_v4 = vpop.f32.mrb[98].mxu0  ;;  %v2067_v26 = vadd.f32 %v2750_v58, %v1993_v21  ;;  %v2235_v38 = vadd.f32 %v2806_v45, %v2161_v54 }
 0x367   :  { %v2807_v22 = vpop.f32.mrb[98].mxu1  ;;  %v2752_v32 = vpop.f32.mrb[99].mxu0 }
 0x368   :  { %v2753_v13 = vadd.f32 %v2752_v32, %v2751_v4  ;;  %v2808_v24 = vpop.f32.mrb[99].mxu1 }
 0x369   :  { %v2809_v53 = vadd.f32 %v2808_v24, %v2807_v22 }
 0x36a   :  { %v2072_v56 = vadd.f32 %v2753_v13, %v1998_v36 }
 0x36b   :  { %v2240_v28 = vadd.f32 %v2809_v53, %v2166_v25 }
 0x3a2   :  { %v3046_v42 = vpop.f32.mrb[100].mxu0 }
 0x3a3   :  { %v2147_v20 = vadd.f32 %v3046_v42, %v2072_v56  ;;  %v2141_v29 = vpop.f32.mrb[101].mxu0 }
 0x3a4   :  { %v2142_v12 = vadd.f32 %v2141_v29, %v2067_v26 }
 0x3a5   :  { %v2437_v18 = vmul.f32 %v2147_v20, %v2147_v20 }
 0x3a6   :  { %v3305_v44 = vpack.c.bf16 %v2147_v20, %v2142_v12  ;;  %v2436_v34 = vmul.f32 %v2142_v12, %v2142_v12 }
 0x3a8   :  { %3307 = vmatpush3.bf16.msk.msra.mxu0 %vm4646_vm5, %v3305_v44 }
 0x3ab   :  { %3087 = vmatmul.mubr.msk.f32.vlgmr.msra.gmra.mrb[104].mxu0 %vm2357_vm6, %v2356_v10 }
 0x3c2   :  { %v3081_v46 = vpop.f32.mrb[102].mxu0 }
 0x3c3   :  { %v2315_v16 = vadd.f32 %v3081_v46, %v2240_v28  ;;  %v2309_v49 = vpop.f32.mrb[103].mxu0 }
 0x3c4   :  { %v2310_v11 = vadd.f32 %v2309_v49, %v2235_v38 }
 0x3c5   :  { %v2325_v8 = vand.u32 2147483647, %v2315_v16  ;;  %v2319_v59 = vmax.f32 %v2315_v16, 0.0  ;;  %vm2321_vm9 = vcmp.ne.f32.partialorder %v2315_v16, %v2315_v16 }
 0x3c6   :  { %v2324_v33 = vand.u32 2147483647, %v2310_v11  ;;  %v2318_v37 = vmax.f32 %v2310_v11, 0.0  ;;  %vm2320_vm10 = vcmp.ne.f32.partialorder %v2310_v11, %v2310_v11 }
 0x3c7   :  { %v2327_v51 = vsub.f32 0.0, %v2325_v8 }
 0x3c8   :  { %v2326_v3 = vsub.f32 0.0, %v2324_v33 }
 0x3c9   :  { %v2330_v40 = vmul.f32 1.442695, %v2327_v51 }
 0x3ca   :  { %v2328_v35 = vmul.f32 1.442695, %v2326_v3 }
 0x3cb   :  { %3324 = vpow2.f32 %v2330_v40 }
 0x3cc   :  { %3326 = vpow2.f32 %v2328_v35 }
 0x3d5   :  { %v3325_v55 = vpop.eup %3324 }
 0x3d6   :  { %v3327_v15 = vpop.eup %3326  ;;  %v2341_v9 = vadd.f32 1.0, %v3325_v55  ;;  %v2344_v23 = vmul.f32 -0.5, %v3325_v55  ;;  %v2347_v14 = vand.u32 2147483647, %v3325_v55 }
 0x3d7   :  { %v2332_v52 = vadd.f32 1.0, %v3327_v15  ;;  %v2335_v60 = vmul.f32 -0.5, %v3327_v15  ;;  %v2338_v57 = vand.u32 2147483647, %v3327_v15 }
 0x3d8   :  { %3328 = vlog2.f32 %v2341_v9  ;;  %v2345_v48 = vadd.f32 1.0, %v2344_v23  ;;  %vm2348_vm7 = vcmp.lt.f32.partialorder %v2347_v14, 0.0004427343 }
 0x3d9   :  { %3330 = vlog2.f32 %v2332_v52  ;;  %v2336_v61 = vadd.f32 1.0, %v2335_v60  ;;  %vm2339_vm8 = vcmp.lt.f32.partialorder %v2338_v57, 0.0004427343 }
 0x3da   :  { %v2346_v17 = vmul.f32 %v3325_v55, %v2345_v48 }
 0x3db   :  { %v2337_v6 = vmul.f32 %v3327_v15, %v2336_v61 }
 0x3e2   :  { %v3329_v0 = vpop.eup %3328 }
 0x3e3   :  { %v3331_v5 = vpop.eup %3330  ;;  %v2343_v1 = vmul.f32 0.6931472, %v3329_v0 }
 0x3e4   :  { %v2334_v2 = vmul.f32 0.6931472, %v3331_v5 }
 0x3e5   :  { %v2349_v63 = vsel %vm2348_vm7, %v2346_v17, %v2343_v1 }
 0x3e6   :  { %v2351_v31 = vadd.f32 %v2349_v63, %v2319_v59  ;;  %v2340_v47 = vsel %vm2339_vm8, %v2337_v6, %v2334_v2 }
 0x3e7   :  { %v2350_v39 = vadd.f32 %v2340_v47, %v2318_v37 }
 0x3e8   :  { %v2353_v7 = vsel %vm2321_vm9, %v2315_v16, %v2351_v31 }
 0x3e9   :  { %v2355_v62 = vadd.f32 1e-06, %v2353_v7  ;;  %v2352_v27 = vsel %vm2320_vm10, %v2310_v11, %v2350_v39 }
 0x3ea   :  { %v2354_v41 = vadd.f32 1e-06, %v2352_v27 }
 0x3eb   :  { %v2439_v19 = vadd.f32 %v2437_v18, %v2355_v62 }
 0x3ec   :  { %v2438_v43 = vadd.f32 %v2436_v34, %v2354_v41 }
 0x3ee   :  { %v3309_v58 = vpack.c.bf16 %v2439_v19, %v2438_v43 }
 0x3f0   :  { %3311 = vmatpush3.bf16.msk.msra.mxu1 %vm4646_vm5, %v3309_v58 }
 0x3f3   :  { %3094 = vmatmul.mubr.msk.f32.vlgmr.msra.gmra.mrb[100].mxu1 %vm2357_vm6, %v2356_v10 }
 0x47e   :  { %v2431_v45 = vpop.f32.mrb[104].mxu0 }
 0x47f   :  { %v2435_v4 = vmul.f32 0.2, %v2431_v45  ;;  %v3088_v22 = vpop.f32.mrb[105].mxu0 }
 0x481   :  { %2515 = vst.msk [vmem:[#allocation5] sm:$0x3] %vm2514_vm11, %v2435_v4 }
 0x482   :  { %3365 = shalt.err (!%p3362_p12)
}
 0x483   :  { %s3366_s19 = scalar_lea.hbm %s4695_s10, 32 }
 0x484   :  { %p3367_p13 = scmp.ne.s32.totalorder %s4695_s10, %s3366_s19  ;;  %p3370_p0 = scmp.lt.u32.totalorder %s3366_s19, %s4695_s10 }
 0x486   :  { %p3372_p1 = pnand %p3370_p0, %p3367_p13 }
 0x488   :  { %3375 = shalt.err (!%p3372_p1)
}
 0x489   :  { %2530 = dma.vmem_to_hbm [thread:$0]  %s2528_s17, 32, %s4695_s10, [#allocation4]   ;;  %v2516_v32 = vmul.f32 %v2435_v4, %v2435_v4 }
 0x48a   :  { %s3413_s0 = smov [#allocation6]  }
 0x48b   :  { %s2537_s4 = sshll.u32 %s3413_s0, 4  ;;  %s2538_s4 = int_to_ptr.vmem [resolvable:$true] %s2537_s4 }
 0x48c   :  { %s3376_s25 = scalar_lea.vmem %s2538_s4, 32  ;;  %p3381_p3 = scmp.lt.s32.totalorder %s2538_s4, %s2538_s4 }
 0x48d   :  { %p3377_p2 = scmp.ne.s32.totalorder %s2538_s4, %s3376_s25  ;;  %p3382_p4 = scmp.lt.s32.totalorder %s3376_s25, %s3376_s25 }
 0x48f   :  { %p3383_p5 = por %p3382_p4, %p3381_p3 }
 0x491   :  { %p3384_p6 = pnand %p3383_p5, %p3377_p2 }
 0x4c6   :  { %v2509_v13 = vpop.f32.mrb[100].mxu1 }
 0x4c7   :  { %v2513_v24 = vmul.f32 0.2, %v2509_v13  ;;  %v3095_v53 = vpop.f32.mrb[101].mxu1 }
 0x4c9   :  { %v2517_v50 = vsub.f32 %v2513_v24, %v2516_v32 }
 0x4cb   :  { %v2518_v25 = vmax.f32 %v2517_v50, 0.0 }
 0x4cd   :  { %v2519_v54 = vadd.f32 1e-06, %v2518_v25 }
 0x4cf   :  { %2520 = vst.msk [vmem:[#allocation6] sm:$0x3] %vm2514_vm11, %v2519_v54 }
 0x4d0   :  { %3387 = shalt.err (!%p3384_p6)
}
 0x4d1   :  { %s3388_s26 = scalar_lea.hbm %s4696_s11, 32 }
 0x4d2   :  { %p3389_p7 = scmp.ne.s32.totalorder %s4696_s11, %s3388_s26  ;;  %p3392_p8 = scmp.lt.u32.totalorder %s3388_s26, %s4696_s11 }
 0x4d4   :  { %p3394_p9 = pnand %p3392_p8, %p3389_p7 }
 0x4d6   :  { %3397 = shalt.err (!%p3394_p9)
}
 0x4d7   :  { %2540 = dma.vmem_to_hbm [thread:$0]  %s2538_s4, 32, %s4696_s11, [#allocation7]  }
 0x4d8   :  { %3400 = dma.done.wait [#allocation4], 32  }
 0x4d9   :  { %3401 = vsyncadd [#allocation4], 4294967264 }
 0x4da   :  { %3402 = dma.done.wait [#allocation7], 32  }
 0x4db   :  { %3403 = vsyncadd [#allocation7], 4294967264 }
 0x4dc   :  { %2547 = vsyncpa [#allocation3], 1 }
 0x4dd   :  { %2548 = vsyncpa [#allocation4], 1 }
 0x4de   :  { %2549 = vsyncpa [#allocation7], 1 }

</bundles_post_ra>
